<compile_context>
chip_gen: v7x
topology: tpu7x:2x2x1
jax: 0.10.0
libtpu: 0.0.40
codegen_flags: <defaults>
</compile_context>

<pallas_src>
import functools

import jax
import jax.numpy as jnp
from jax.experimental import pallas as pl
from jax.experimental.pallas import tpu as pltpu


def _mha_kernel(x_ref, wq_ref, wk_ref, wv_ref, wproj_h_ref, b_ref, o_ref, *,
                grp, seq, valid_seq, num_heads, head_dim, out_dim):
    """One grid step: `grp` independent (seq, Dp) slabs stacked as (grp*seq, Dp)."""
    m_rows = grp * seq

    # bf16 MXU feeds; every accumulation stays f32.
    x = x_ref[...].astype(jnp.bfloat16)                                  # (M, Dp)

    # Q/K/V projections: three wide MXU matmuls (qk scale pre-folded into Wq^T).
    q = jnp.dot(x, wq_ref[...], preferred_element_type=jnp.float32)     # (M, Dp)
    k = jnp.dot(x, wk_ref[...], preferred_element_type=jnp.float32)
    v = jnp.dot(x, wv_ref[...], preferred_element_type=jnp.float32)

    # Key-padding mask, hoisted out of the head loop (broadcasts over query rows).
    if valid_seq < seq:
        col = jax.lax.broadcasted_iota(jnp.int32, (1, 1, seq), 2)
        key_bias = jnp.where(col < valid_seq, 0.0, -1e30).astype(jnp.float32)
    else:
        key_bias = None

    # Per-head attention + accumulated output projection. The only per-head data
    # movement is one static lane slice per tensor (no stacks / concats), and
    # Wproj^T is pre-split by head in the wrapper so indexing it here is free.
    y_acc = jnp.zeros((m_rows, out_dim), jnp.float32)
    for h in range(num_heads):
        lo = h * head_dim
        hi = lo + head_dim
        qh = q[:, lo:hi].reshape(grp, seq, head_dim).astype(jnp.bfloat16)
        kh = k[:, lo:hi].reshape(grp, seq, head_dim).astype(jnp.bfloat16)
        vh = v[:, lo:hi].reshape(grp, seq, head_dim).astype(jnp.bfloat16)

        s = jnp.einsum('gqd,gkd->gqk', qh, kh,
                       preferred_element_type=jnp.float32)       # (grp, seq, seq) f32
        if key_bias is not None:
            s = s + key_bias
        s = s - jnp.max(s, axis=-1, keepdims=True)
        p = jnp.exp(s)
        inv = pl.reciprocal(jnp.sum(p, axis=-1, keepdims=True), approx=True)
        p = (p * inv).astype(jnp.bfloat16)                       # attn_drop(p=0) == id

        ctx = jnp.einsum('gqk,gkd->gqd', p, vh,
                         preferred_element_type=jnp.float32)     # (grp, seq, hd) f32
        ctx = ctx.reshape(m_rows, head_dim).astype(jnp.bfloat16)
        y_acc = y_acc + jnp.dot(ctx, wproj_h_ref[h],
                                preferred_element_type=jnp.float32)

    # Output projection bias; proj_drop(p=0) == identity.
    o_ref[...] = (y_acc + b_ref[...]).astype(o_ref.dtype)


def _vmem_budget_bytes():
    """Per-generation VMEM budget (leave headroom under physical capacity)."""
    try:
        cap = int(pltpu.get_tpu_info().vmem_capacity_bytes)
    except Exception:
        cap = 64 * 1024 * 1024          # conservative (v7x-sized) fallback
    return min(cap * 3 // 4, 100 * 1024 * 1024)   # 48 MiB on v7x, ~96 MiB on v5e/v6e


def _divisor_at_most(n, g):
    g = max(1, min(g, n))
    while g > 1 and n % g:
        g -= 1
    return g


def _choose_group(n_slabs, seq_pad, d_pad, num_heads, head_dim, vmem_budget):
    """Slabs fused per grid step: ~256 MXU rows, VMEM-budgeted, >=4 steps if possible."""
    def vmem_est(g):
        m = g * seq_pad
        io = 2 * 2 * m * d_pad * 4                                   # x + out blocks, dbl-buffered f32
        wts = 2 * (3 * d_pad * d_pad + num_heads * head_dim * d_pad) * 2 + 2 * d_pad * 4
        tmp = (m * d_pad * 2                                         # bf16 x copy
               + 3 * m * d_pad * 4                                   # q, k, v (f32)
               + m * d_pad * 4                                       # y accumulator
               + 2 * g * seq_pad * seq_pad * 4                       # one head's s / p
               + m * head_dim * 6)                                   # ctx f32 + bf16
        return io + wts + tmp

    g = _divisor_at_most(n_slabs, max(1, 256 // max(seq_pad, 1)))    # ~256 MXU rows/step
    while g > 1 and vmem_est(g) > vmem_budget:                       # fit v7x 64 MiB etc.
        g = _divisor_at_most(n_slabs, g - 1)
    while g > 1 and n_slabs // g < min(4, n_slabs):                  # >=2 steps per v7x core
        g = _divisor_at_most(n_slabs, g - 1)
    return g


def multihead_attention(x, wqkv, wproj, bproj, *, num_heads, spatial=True, qk_scale=None):
    """x: (B, F, L, D) float32. wqkv: (3D, D) / wproj: (D, D) in torch Linear layout,
    bproj: (D,). Returns (B, F, L, D)."""
    if not spatial:
        x = jnp.transpose(x, (0, 2, 1, 3))
    B, F, L, D = x.shape
    assert D % num_heads == 0, "token_dim must be divisible by num_heads"
    head_dim = D // num_heads
    scale = qk_scale if qk_scale is not None else head_dim ** (-0.5)

    # Pad attended axis to a multiple of 8 (sublane) and token dim to a multiple
    # of 128 (lane-dense blocks / unmasked stores). Padded keys masked in-kernel.
    Lp = (L + 7) // 8 * 8
    Dp = (D + 127) // 128 * 128
    pad = ((0, 0), (0, 0), (0, Lp - L), (0, Dp - D))
    if Lp != L or Dp != D:
        x = jnp.pad(x, pad)

    n = B * F
    vmem_budget = _vmem_budget_bytes()
    grp = _choose_group(n, Lp, Dp, num_heads, head_dim, vmem_budget)
    m_rows = grp * Lp

    x2 = x.reshape(n * Lp, Dp)                       # 2-D token matrix (slabs contiguous)

    # Weight prep hoisted out of the kernel: split q/k/v, transpose to "x @ W^T"
    # layout, fold qk scale into Wq, pad to Dp, cast to bf16.
    wq, wk, wv = wqkv[0 * D:1 * D], wqkv[1 * D:2 * D], wqkv[2 * D:3 * D]

    def prep(w, s=1.0):
        wt = jnp.transpose(w) * s                    # (D_in, D_out)
        wt = jnp.pad(wt, ((0, Dp - D), (0, Dp - D)))
        return wt.astype(jnp.bfloat16)

    wq_t = prep(wq, scale)
    wk_t = prep(wk)
    wv_t = prep(wv)

    # Per-head slabs of Wproj^T: (H, head_dim, Dp); head split done once here so
    # the kernel indexes the head axis (a free major-dim index) instead of slicing.
    wproj_t = jnp.pad(jnp.transpose(wproj), ((0, 0), (0, Dp - D)))
    wproj_heads = wproj_t.reshape(num_heads, head_dim, Dp).astype(jnp.bfloat16)
    bias2 = jnp.pad(bproj, (0, Dp - D)).reshape(1, Dp).astype(jnp.float32)

    kern = functools.partial(_mha_kernel, grp=grp, seq=Lp, valid_seq=L,
                             num_heads=num_heads, head_dim=head_dim, out_dim=Dp)

    out = pl.pallas_call(
        kern,
        out_shape=jax.ShapeDtypeStruct((n * Lp, Dp), x.dtype),
        grid_spec=pltpu.PrefetchScalarGridSpec(
            num_scalar_prefetch=0,
            grid=(n // grp,),
            in_specs=[
                pl.BlockSpec((m_rows, Dp), lambda i: (i, 0)),              # token slab group
                pl.BlockSpec((Dp, Dp), lambda i: (0, 0)),                  # Wq^T * scale (bf16)
                pl.BlockSpec((Dp, Dp), lambda i: (0, 0)),                  # Wk^T (bf16)
                pl.BlockSpec((Dp, Dp), lambda i: (0, 0)),                  # Wv^T (bf16)
                pl.BlockSpec((num_heads, head_dim, Dp), lambda i: (0, 0, 0)),  # per-head Wproj^T
                pl.BlockSpec((1, Dp), lambda i: (0, 0)),                   # proj bias
            ],
            out_specs=pl.BlockSpec((m_rows, Dp), lambda i: (i, 0)),
        ),
        compiler_params=pltpu.CompilerParams(
            dimension_semantics=("parallel",),
            vmem_limit_bytes=vmem_budget),
    )(x2, wq_t, wk_t, wv_t, wproj_heads, bias2)

    out = out.reshape(B, F, Lp, Dp)
    if Lp != L:
        out = out[:, :, :L, :]
    if Dp != D:
        out = out[..., :D]
    if not spatial:
        out = jnp.transpose(out, (0, 2, 1, 3))
    return out


def _reference(x, wqkv, wproj, bproj, *, num_heads, spatial=True, qk_scale=None):
    """Pure-JAX reference mirroring the PyTorch forward exactly."""
    x_in = x if spatial else jnp.transpose(x, (0, 2, 1, 3))
    B, F, L, D = x_in.shape
    hd = D // num_heads
    scale = qk_scale if qk_scale is not None else hd ** (-0.5)
    qkv = jnp.einsum('bfld,ed->bfle', x_in, wqkv)
    qkv = qkv.reshape(B, F, L, 3, num_heads, hd)
    qkv = jnp.transpose(qkv, (3, 0, 1, 4, 2, 5))
    q, k, v = qkv[0], qkv[1], qkv[2]
    attn = jnp.einsum('bfhld,bfhmd->bfhlm', q, k) * scale
    attn = jax.nn.softmax(attn, axis=-1)
    x_out = jnp.einsum('bfhlm,bfhmd->bfhld', attn, v)
    x_out = jnp.transpose(x_out, (0, 1, 3, 2, 4)).reshape(B, F, L, D)
    x_out = jnp.einsum('bfld,ed->bfle', x_out, wproj) + bproj
    if not spatial:
        x_out = jnp.transpose(x_out, (0, 2, 1, 3))
    return x_out


if __name__ == "__main__":
    # Small shapes consistent with the module's expected (B, F, L, D) input.
    B, F, L, D = 2, 4, 16, 32
    num_heads = 8

    key = jax.random.PRNGKey(0)
    kx, kw1, kw2, kb = jax.random.split(key, 4)

    x = jax.random.normal(kx, (B, F, L, D), dtype=jnp.float32)
    # nn.Linear layout: weights are (out_features, in_features); qkv_bias=False.
    wqkv = 0.05 * jax.random.normal(kw1, (3 * D, D), dtype=jnp.float32)
    wproj = 0.05 * jax.random.normal(kw2, (D, D), dtype=jnp.float32)
    bproj = 0.05 * jax.random.normal(kb, (D,), dtype=jnp.float32)

    # bf16 MXU feeds + approx reciprocal -> compare against the f32 reference at
    # a correspondingly loosened tolerance.
    tol = dict(atol=2e-2, rtol=2e-2)

    out = jax.block_until_ready(
        multihead_attention(x, wqkv, wproj, bproj, num_heads=num_heads, spatial=True))
    ref = _reference(x, wqkv, wproj, bproj, num_heads=num_heads, spatial=True)
    assert out.shape == (B, F, L, D)
    assert jnp.allclose(out, ref, **tol)

    # Temporal (spatial=False) path: attended axis gets padded + masked in-kernel.
    out_t = jax.block_until_ready(
        multihead_attention(x, wqkv, wproj, bproj, num_heads=num_heads, spatial=False))
    ref_t = _reference(x, wqkv, wproj, bproj, num_heads=num_heads, spatial=False)
    assert jnp.allclose(out_t, ref_t, **tol)

    print("KERNEL_OK")
</pallas_src>

<mosaic_0001>
module attributes {stable_mosaic.version = 11 : i64} {
  func.func @_mha_kernel(%arg0: i32, %arg1: memref<32x128xf32, #tpu.memory_space<vmem>>, %arg2: memref<128x128xbf16, #tpu.memory_space<vmem>>, %arg3: memref<128x128xbf16, #tpu.memory_space<vmem>>, %arg4: memref<128x128xbf16, #tpu.memory_space<vmem>>, %arg5: memref<8x4x128xbf16, #tpu.memory_space<vmem>>, %arg6: memref<1x128xf32, #tpu.memory_space<vmem>>, %arg7: memref<32x128xf32, #tpu.memory_space<vmem>>) attributes {dimension_semantics = [#tpu.dimension_semantics<parallel>], iteration_bounds = array<i64: 4>, scalar_prefetch = 0 : i64, scratch_operands = 0 : i64, tpu.core_type = #tpu.core_type<tc>, window_params = [{transform_indices = @transform_0, window_bounds = array<i64: 32, 128>}, {pipeline_mode = #tpu.pipeline_mode<synchronous>, transform_indices = @transform_1, window_bounds = array<i64: 128, 128>}, {pipeline_mode = #tpu.pipeline_mode<synchronous>, transform_indices = @transform_2, window_bounds = array<i64: 128, 128>}, {pipeline_mode = #tpu.pipeline_mode<synchronous>, transform_indices = @transform_3, window_bounds = array<i64: 128, 128>}, {pipeline_mode = #tpu.pipeline_mode<synchronous>, transform_indices = @transform_4, window_bounds = array<i64: 8, 4, 128>}, {pipeline_mode = #tpu.pipeline_mode<synchronous>, transform_indices = @transform_5, window_bounds = array<i64: 1, 128>}, {transform_indices = @transform_6, window_bounds = array<i64: 32, 128>}]} {
    %c0 = arith.constant 0 : index
    %c0_0 = arith.constant 0 : index
    %0 = vector.load %arg1[%c0, %c0_0] : memref<32x128xf32, #tpu.memory_space<vmem>>, vector<32x128xf32>
    %1 = arith.truncf %0 : vector<32x128xf32> to vector<32x128xbf16>
    %c0_1 = arith.constant 0 : index
    %c0_2 = arith.constant 0 : index
    %2 = vector.load %arg2[%c0_1, %c0_2] : memref<128x128xbf16, #tpu.memory_space<vmem>>, vector<128x128xbf16>
    %cst = arith.constant dense<0.000000e+00> : vector<32x128xf32>
    %3 = tpu.matmul %1, %2, %cst {dimension_numbers = #tpu.dot_dimension_numbers<[1], [0], [0], [1], [0, 0, 1, 1], [], []>} : vector<32x128xbf16>, vector<128x128xbf16>, vector<32x128xf32> -> vector<32x128xf32>
    %c0_3 = arith.constant 0 : index
    %c0_4 = arith.constant 0 : index
    %4 = vector.load %arg3[%c0_3, %c0_4] : memref<128x128xbf16, #tpu.memory_space<vmem>>, vector<128x128xbf16>
    %cst_5 = arith.constant dense<0.000000e+00> : vector<32x128xf32>
    %5 = tpu.matmul %1, %4, %cst_5 {dimension_numbers = #tpu.dot_dimension_numbers<[1], [0], [0], [1], [0, 0, 1, 1], [], []>} : vector<32x128xbf16>, vector<128x128xbf16>, vector<32x128xf32> -> vector<32x128xf32>
    %c0_6 = arith.constant 0 : index
    %c0_7 = arith.constant 0 : index
    %6 = vector.load %arg4[%c0_6, %c0_7] : memref<128x128xbf16, #tpu.memory_space<vmem>>, vector<128x128xbf16>
    %cst_8 = arith.constant dense<0.000000e+00> : vector<32x128xf32>
    %7 = tpu.matmul %1, %6, %cst_8 {dimension_numbers = #tpu.dot_dimension_numbers<[1], [0], [0], [1], [0, 0, 1, 1], [], []>} : vector<32x128xbf16>, vector<128x128xbf16>, vector<32x128xf32> -> vector<32x128xf32>
    %cst_9 = arith.constant 0.000000e+00 : f32
    %8 = vector.broadcast %cst_9 : f32 to vector<32x128xf32>
    %9 = vector.extract_strided_slice %3 {offsets = [0, 0], sizes = [32, 4], strides = [1, 1]} : vector<32x128xf32> to vector<32x4xf32>
    %10 = vector.shape_cast %9 : vector<32x4xf32> to vector<2x16x4xf32>
    %11 = arith.truncf %10 : vector<2x16x4xf32> to vector<2x16x4xbf16>
    %12 = vector.extract_strided_slice %5 {offsets = [0, 0], sizes = [32, 4], strides = [1, 1]} : vector<32x128xf32> to vector<32x4xf32>
    %13 = vector.shape_cast %12 : vector<32x4xf32> to vector<2x16x4xf32>
    %14 = arith.truncf %13 : vector<2x16x4xf32> to vector<2x16x4xbf16>
    %15 = vector.extract_strided_slice %7 {offsets = [0, 0], sizes = [32, 4], strides = [1, 1]} : vector<32x128xf32> to vector<32x4xf32>
    %16 = vector.shape_cast %15 : vector<32x4xf32> to vector<2x16x4xf32>
    %17 = arith.truncf %16 : vector<2x16x4xf32> to vector<2x16x4xbf16>
    "tpu.trace_start"() <{level = 10 : i32, message = "gqd,gkd->gqk"}> : () -> ()
    %cst_10 = arith.constant dense<0.000000e+00> : vector<2x16x16xf32>
    %18 = tpu.matmul %11, %14, %cst_10 {dimension_numbers = #tpu.dot_dimension_numbers<[2], [2], [1], [1], [0, 0, 0, 1, 1, 1], [0], [0]>} : vector<2x16x4xbf16>, vector<2x16x4xbf16>, vector<2x16x16xf32> -> vector<2x16x16xf32>
    "tpu.trace_stop"() : () -> ()
    %cst_11 = arith.constant dense<0xFF800000> : vector<2x16xf32>
    %19 = vector.multi_reduction <maximumf>, %18, %cst_11 [2] : vector<2x16x16xf32> to vector<2x16xf32>
    %20 = vector.shape_cast %19 : vector<2x16xf32> to vector<2x16x1xf32>
    %21 = vector.broadcast %20 : vector<2x16x1xf32> to vector<2x16x16xf32>
    %22 = arith.subf %18, %21 : vector<2x16x16xf32>
    %23 = math.exp %22 : vector<2x16x16xf32>
    %cst_12 = arith.constant dense<0.000000e+00> : vector<2x16xf32>
    %24 = vector.multi_reduction <add>, %23, %cst_12 [2] : vector<2x16x16xf32> to vector<2x16xf32>
    %25 = vector.shape_cast %24 : vector<2x16xf32> to vector<2x16x1xf32>
    %26 = tpu.reciprocal %25 {approx = true} : vector<2x16x1xf32> -> vector<2x16x1xf32>
    %27 = vector.broadcast %26 : vector<2x16x1xf32> to vector<2x16x16xf32>
    %28 = arith.mulf %23, %27 : vector<2x16x16xf32>
    %29 = arith.truncf %28 : vector<2x16x16xf32> to vector<2x16x16xbf16>
    "tpu.trace_start"() <{level = 10 : i32, message = "gqk,gkd->gqd"}> : () -> ()
    %cst_13 = arith.constant dense<0.000000e+00> : vector<2x16x4xf32>
    %30 = tpu.matmul %29, %17, %cst_13 {dimension_numbers = #tpu.dot_dimension_numbers<[2], [1], [1], [2], [0, 0, 0, 1, 1, 2], [0], [0]>} : vector<2x16x16xbf16>, vector<2x16x4xbf16>, vector<2x16x4xf32> -> vector<2x16x4xf32>
    "tpu.trace_stop"() : () -> ()
    %31 = vector.shape_cast %30 : vector<2x16x4xf32> to vector<32x4xf32>
    %32 = arith.truncf %31 : vector<32x4xf32> to vector<32x4xbf16>
    %c0_14 = arith.constant 0 : index
    %c0_15 = arith.constant 0 : index
    %c0_16 = arith.constant 0 : index
    %33 = vector.load %arg5[%c0_14, %c0_15, %c0_16] : memref<8x4x128xbf16, #tpu.memory_space<vmem>>, vector<1x4x128xbf16>
    %34 = vector.shape_cast %33 : vector<1x4x128xbf16> to vector<4x128xbf16>
    %cst_17 = arith.constant dense<0.000000e+00> : vector<32x128xf32>
    %35 = tpu.matmul %32, %34, %cst_17 {dimension_numbers = #tpu.dot_dimension_numbers<[1], [0], [0], [1], [0, 0, 1, 1], [], []>} : vector<32x4xbf16>, vector<4x128xbf16>, vector<32x128xf32> -> vector<32x128xf32>
    %36 = arith.addf %8, %35 : vector<32x128xf32>
    %37 = vector.extract_strided_slice %3 {offsets = [0, 4], sizes = [32, 4], strides = [1, 1]} : vector<32x128xf32> to vector<32x4xf32>
    %38 = vector.shape_cast %37 : vector<32x4xf32> to vector<2x16x4xf32>
    %39 = arith.truncf %38 : vector<2x16x4xf32> to vector<2x16x4xbf16>
    %40 = vector.extract_strided_slice %5 {offsets = [0, 4], sizes = [32, 4], strides = [1, 1]} : vector<32x128xf32> to vector<32x4xf32>
    %41 = vector.shape_cast %40 : vector<32x4xf32> to vector<2x16x4xf32>
    %42 = arith.truncf %41 : vector<2x16x4xf32> to vector<2x16x4xbf16>
    %43 = vector.extract_strided_slice %7 {offsets = [0, 4], sizes = [32, 4], strides = [1, 1]} : vector<32x128xf32> to vector<32x4xf32>
    %44 = vector.shape_cast %43 : vector<32x4xf32> to vector<2x16x4xf32>
    %45 = arith.truncf %44 : vector<2x16x4xf32> to vector<2x16x4xbf16>
    "tpu.trace_start"() <{level = 10 : i32, message = "gqd,gkd->gqk"}> : () -> ()
    %cst_18 = arith.constant dense<0.000000e+00> : vector<2x16x16xf32>
    %46 = tpu.matmul %39, %42, %cst_18 {dimension_numbers = #tpu.dot_dimension_numbers<[2], [2], [1], [1], [0, 0, 0, 1, 1, 1], [0], [0]>} : vector<2x16x4xbf16>, vector<2x16x4xbf16>, vector<2x16x16xf32> -> vector<2x16x16xf32>
    "tpu.trace_stop"() : () -> ()
    %cst_19 = arith.constant dense<0xFF800000> : vector<2x16xf32>
    %47 = vector.multi_reduction <maximumf>, %46, %cst_19 [2] : vector<2x16x16xf32> to vector<2x16xf32>
    %48 = vector.shape_cast %47 : vector<2x16xf32> to vector<2x16x1xf32>
    %49 = vector.broadcast %48 : vector<2x16x1xf32> to vector<2x16x16xf32>
    %50 = arith.subf %46, %49 : vector<2x16x16xf32>
    %51 = math.exp %50 : vector<2x16x16xf32>
    %cst_20 = arith.constant dense<0.000000e+00> : vector<2x16xf32>
    %52 = vector.multi_reduction <add>, %51, %cst_20 [2] : vector<2x16x16xf32> to vector<2x16xf32>
    %53 = vector.shape_cast %52 : vector<2x16xf32> to vector<2x16x1xf32>
    %54 = tpu.reciprocal %53 {approx = true} : vector<2x16x1xf32> -> vector<2x16x1xf32>
    %55 = vector.broadcast %54 : vector<2x16x1xf32> to vector<2x16x16xf32>
    %56 = arith.mulf %51, %55 : vector<2x16x16xf32>
    %57 = arith.truncf %56 : vector<2x16x16xf32> to vector<2x16x16xbf16>
    "tpu.trace_start"() <{level = 10 : i32, message = "gqk,gkd->gqd"}> : () -> ()
    %cst_21 = arith.constant dense<0.000000e+00> : vector<2x16x4xf32>
    %58 = tpu.matmul %57, %45, %cst_21 {dimension_numbers = #tpu.dot_dimension_numbers<[2], [1], [1], [2], [0, 0, 0, 1, 1, 2], [0], [0]>} : vector<2x16x16xbf16>, vector<2x16x4xbf16>, vector<2x16x4xf32> -> vector<2x16x4xf32>
    "tpu.trace_stop"() : () -> ()
    %59 = vector.shape_cast %58 : vector<2x16x4xf32> to vector<32x4xf32>
    %60 = arith.truncf %59 : vector<32x4xf32> to vector<32x4xbf16>
    %c1 = arith.constant 1 : index
    %c0_22 = arith.constant 0 : index
    %c0_23 = arith.constant 0 : index
    %61 = vector.load %arg5[%c1, %c0_22, %c0_23] : memref<8x4x128xbf16, #tpu.memory_space<vmem>>, vector<1x4x128xbf16>
    %62 = vector.shape_cast %61 : vector<1x4x128xbf16> to vector<4x128xbf16>
    %cst_24 = arith.constant dense<0.000000e+00> : vector<32x128xf32>
    %63 = tpu.matmul %60, %62, %cst_24 {dimension_numbers = #tpu.dot_dimension_numbers<[1], [0], [0], [1], [0, 0, 1, 1], [], []>} : vector<32x4xbf16>, vector<4x128xbf16>, vector<32x128xf32> -> vector<32x128xf32>
    %64 = arith.addf %36, %63 : vector<32x128xf32>
    %65 = vector.extract_strided_slice %3 {offsets = [0, 8], sizes = [32, 4], strides = [1, 1]} : vector<32x128xf32> to vector<32x4xf32>
    %66 = vector.shape_cast %65 : vector<32x4xf32> to vector<2x16x4xf32>
    %67 = arith.truncf %66 : vector<2x16x4xf32> to vector<2x16x4xbf16>
    %68 = vector.extract_strided_slice %5 {offsets = [0, 8], sizes = [32, 4], strides = [1, 1]} : vector<32x128xf32> to vector<32x4xf32>
    %69 = vector.shape_cast %68 : vector<32x4xf32> to vector<2x16x4xf32>
    %70 = arith.truncf %69 : vector<2x16x4xf32> to vector<2x16x4xbf16>
    %71 = vector.extract_strided_slice %7 {offsets = [0, 8], sizes = [32, 4], strides = [1, 1]} : vector<32x128xf32> to vector<32x4xf32>
    %72 = vector.shape_cast %71 : vector<32x4xf32> to vector<2x16x4xf32>
    %73 = arith.truncf %72 : vector<2x16x4xf32> to vector<2x16x4xbf16>
    "tpu.trace_start"() <{level = 10 : i32, message = "gqd,gkd->gqk"}> : () -> ()
    %cst_25 = arith.constant dense<0.000000e+00> : vector<2x16x16xf32>
    %74 = tpu.matmul %67, %70, %cst_25 {dimension_numbers = #tpu.dot_dimension_numbers<[2], [2], [1], [1], [0, 0, 0, 1, 1, 1], [0], [0]>} : vector<2x16x4xbf16>, vector<2x16x4xbf16>, vector<2x16x16xf32> -> vector<2x16x16xf32>
    "tpu.trace_stop"() : () -> ()
    %cst_26 = arith.constant dense<0xFF800000> : vector<2x16xf32>
    %75 = vector.multi_reduction <maximumf>, %74, %cst_26 [2] : vector<2x16x16xf32> to vector<2x16xf32>
    %76 = vector.shape_cast %75 : vector<2x16xf32> to vector<2x16x1xf32>
    %77 = vector.broadcast %76 : vector<2x16x1xf32> to vector<2x16x16xf32>
    %78 = arith.subf %74, %77 : vector<2x16x16xf32>
    %79 = math.exp %78 : vector<2x16x16xf32>
    %cst_27 = arith.constant dense<0.000000e+00> : vector<2x16xf32>
    %80 = vector.multi_reduction <add>, %79, %cst_27 [2] : vector<2x16x16xf32> to vector<2x16xf32>
    %81 = vector.shape_cast %80 : vector<2x16xf32> to vector<2x16x1xf32>
    %82 = tpu.reciprocal %81 {approx = true} : vector<2x16x1xf32> -> vector<2x16x1xf32>
    %83 = vector.broadcast %82 : vector<2x16x1xf32> to vector<2x16x16xf32>
    %84 = arith.mulf %79, %83 : vector<2x16x16xf32>
    %85 = arith.truncf %84 : vector<2x16x16xf32> to vector<2x16x16xbf16>
    "tpu.trace_start"() <{level = 10 : i32, message = "gqk,gkd->gqd"}> : () -> ()
    %cst_28 = arith.constant dense<0.000000e+00> : vector<2x16x4xf32>
    %86 = tpu.matmul %85, %73, %cst_28 {dimension_numbers = #tpu.dot_dimension_numbers<[2], [1], [1], [2], [0, 0, 0, 1, 1, 2], [0], [0]>} : vector<2x16x16xbf16>, vector<2x16x4xbf16>, vector<2x16x4xf32> -> vector<2x16x4xf32>
    "tpu.trace_stop"() : () -> ()
    %87 = vector.shape_cast %86 : vector<2x16x4xf32> to vector<32x4xf32>
    %88 = arith.truncf %87 : vector<32x4xf32> to vector<32x4xbf16>
    %c2 = arith.constant 2 : index
    %c0_29 = arith.constant 0 : index
    %c0_30 = arith.constant 0 : index
    %89 = vector.load %arg5[%c2, %c0_29, %c0_30] : memref<8x4x128xbf16, #tpu.memory_space<vmem>>, vector<1x4x128xbf16>
    %90 = vector.shape_cast %89 : vector<1x4x128xbf16> to vector<4x128xbf16>
    %cst_31 = arith.constant dense<0.000000e+00> : vector<32x128xf32>
    %91 = tpu.matmul %88, %90, %cst_31 {dimension_numbers = #tpu.dot_dimension_numbers<[1], [0], [0], [1], [0, 0, 1, 1], [], []>} : vector<32x4xbf16>, vector<4x128xbf16>, vector<32x128xf32> -> vector<32x128xf32>
    %92 = arith.addf %64, %91 : vector<32x128xf32>
    %93 = vector.extract_strided_slice %3 {offsets = [0, 12], sizes = [32, 4], strides = [1, 1]} : vector<32x128xf32> to vector<32x4xf32>
    %94 = vector.shape_cast %93 : vector<32x4xf32> to vector<2x16x4xf32>
    %95 = arith.truncf %94 : vector<2x16x4xf32> to vector<2x16x4xbf16>
    %96 = vector.extract_strided_slice %5 {offsets = [0, 12], sizes = [32, 4], strides = [1, 1]} : vector<32x128xf32> to vector<32x4xf32>
    %97 = vector.shape_cast %96 : vector<32x4xf32> to vector<2x16x4xf32>
    %98 = arith.truncf %97 : vector<2x16x4xf32> to vector<2x16x4xbf16>
    %99 = vector.extract_strided_slice %7 {offsets = [0, 12], sizes = [32, 4], strides = [1, 1]} : vector<32x128xf32> to vector<32x4xf32>
    %100 = vector.shape_cast %99 : vector<32x4xf32> to vector<2x16x4xf32>
    %101 = arith.truncf %100 : vector<2x16x4xf32> to vector<2x16x4xbf16>
    "tpu.trace_start"() <{level = 10 : i32, message = "gqd,gkd->gqk"}> : () -> ()
    %cst_32 = arith.constant dense<0.000000e+00> : vector<2x16x16xf32>
    %102 = tpu.matmul %95, %98, %cst_32 {dimension_numbers = #tpu.dot_dimension_numbers<[2], [2], [1], [1], [0, 0, 0, 1, 1, 1], [0], [0]>} : vector<2x16x4xbf16>, vector<2x16x4xbf16>, vector<2x16x16xf32> -> vector<2x16x16xf32>
    "tpu.trace_stop"() : () -> ()
    %cst_33 = arith.constant dense<0xFF800000> : vector<2x16xf32>
    %103 = vector.multi_reduction <maximumf>, %102, %cst_33 [2] : vector<2x16x16xf32> to vector<2x16xf32>
    %104 = vector.shape_cast %103 : vector<2x16xf32> to vector<2x16x1xf32>
    %105 = vector.broadcast %104 : vector<2x16x1xf32> to vector<2x16x16xf32>
    %106 = arith.subf %102, %105 : vector<2x16x16xf32>
    %107 = math.exp %106 : vector<2x16x16xf32>
    %cst_34 = arith.constant dense<0.000000e+00> : vector<2x16xf32>
    %108 = vector.multi_reduction <add>, %107, %cst_34 [2] : vector<2x16x16xf32> to vector<2x16xf32>
    %109 = vector.shape_cast %108 : vector<2x16xf32> to vector<2x16x1xf32>
    %110 = tpu.reciprocal %109 {approx = true} : vector<2x16x1xf32> -> vector<2x16x1xf32>
    %111 = vector.broadcast %110 : vector<2x16x1xf32> to vector<2x16x16xf32>
    %112 = arith.mulf %107, %111 : vector<2x16x16xf32>
    %113 = arith.truncf %112 : vector<2x16x16xf32> to vector<2x16x16xbf16>
    "tpu.trace_start"() <{level = 10 : i32, message = "gqk,gkd->gqd"}> : () -> ()
    %cst_35 = arith.constant dense<0.000000e+00> : vector<2x16x4xf32>
    %114 = tpu.matmul %113, %101, %cst_35 {dimension_numbers = #tpu.dot_dimension_numbers<[2], [1], [1], [2], [0, 0, 0, 1, 1, 2], [0], [0]>} : vector<2x16x16xbf16>, vector<2x16x4xbf16>, vector<2x16x4xf32> -> vector<2x16x4xf32>
    "tpu.trace_stop"() : () -> ()
    %115 = vector.shape_cast %114 : vector<2x16x4xf32> to vector<32x4xf32>
    %116 = arith.truncf %115 : vector<32x4xf32> to vector<32x4xbf16>
    %c3 = arith.constant 3 : index
    %c0_36 = arith.constant 0 : index
    %c0_37 = arith.constant 0 : index
    %117 = vector.load %arg5[%c3, %c0_36, %c0_37] : memref<8x4x128xbf16, #tpu.memory_space<vmem>>, vector<1x4x128xbf16>
    %118 = vector.shape_cast %117 : vector<1x4x128xbf16> to vector<4x128xbf16>
    %cst_38 = arith.constant dense<0.000000e+00> : vector<32x128xf32>
    %119 = tpu.matmul %116, %118, %cst_38 {dimension_numbers = #tpu.dot_dimension_numbers<[1], [0], [0], [1], [0, 0, 1, 1], [], []>} : vector<32x4xbf16>, vector<4x128xbf16>, vector<32x128xf32> -> vector<32x128xf32>
    %120 = arith.addf %92, %119 : vector<32x128xf32>
    %121 = vector.extract_strided_slice %3 {offsets = [0, 16], sizes = [32, 4], strides = [1, 1]} : vector<32x128xf32> to vector<32x4xf32>
    %122 = vector.shape_cast %121 : vector<32x4xf32> to vector<2x16x4xf32>
    %123 = arith.truncf %122 : vector<2x16x4xf32> to vector<2x16x4xbf16>
    %124 = vector.extract_strided_slice %5 {offsets = [0, 16], sizes = [32, 4], strides = [1, 1]} : vector<32x128xf32> to vector<32x4xf32>
    %125 = vector.shape_cast %124 : vector<32x4xf32> to vector<2x16x4xf32>
    %126 = arith.truncf %125 : vector<2x16x4xf32> to vector<2x16x4xbf16>
    %127 = vector.extract_strided_slice %7 {offsets = [0, 16], sizes = [32, 4], strides = [1, 1]} : vector<32x128xf32> to vector<32x4xf32>
    %128 = vector.shape_cast %127 : vector<32x4xf32> to vector<2x16x4xf32>
    %129 = arith.truncf %128 : vector<2x16x4xf32> to vector<2x16x4xbf16>
    "tpu.trace_start"() <{level = 10 : i32, message = "gqd,gkd->gqk"}> : () -> ()
    %cst_39 = arith.constant dense<0.000000e+00> : vector<2x16x16xf32>
    %130 = tpu.matmul %123, %126, %cst_39 {dimension_numbers = #tpu.dot_dimension_numbers<[2], [2], [1], [1], [0, 0, 0, 1, 1, 1], [0], [0]>} : vector<2x16x4xbf16>, vector<2x16x4xbf16>, vector<2x16x16xf32> -> vector<2x16x16xf32>
    "tpu.trace_stop"() : () -> ()
    %cst_40 = arith.constant dense<0xFF800000> : vector<2x16xf32>
    %131 = vector.multi_reduction <maximumf>, %130, %cst_40 [2] : vector<2x16x16xf32> to vector<2x16xf32>
    %132 = vector.shape_cast %131 : vector<2x16xf32> to vector<2x16x1xf32>
    %133 = vector.broadcast %132 : vector<2x16x1xf32> to vector<2x16x16xf32>
    %134 = arith.subf %130, %133 : vector<2x16x16xf32>
    %135 = math.exp %134 : vector<2x16x16xf32>
    %cst_41 = arith.constant dense<0.000000e+00> : vector<2x16xf32>
    %136 = vector.multi_reduction <add>, %135, %cst_41 [2] : vector<2x16x16xf32> to vector<2x16xf32>
    %137 = vector.shape_cast %136 : vector<2x16xf32> to vector<2x16x1xf32>
    %138 = tpu.reciprocal %137 {approx = true} : vector<2x16x1xf32> -> vector<2x16x1xf32>
    %139 = vector.broadcast %138 : vector<2x16x1xf32> to vector<2x16x16xf32>
    %140 = arith.mulf %135, %139 : vector<2x16x16xf32>
    %141 = arith.truncf %140 : vector<2x16x16xf32> to vector<2x16x16xbf16>
    "tpu.trace_start"() <{level = 10 : i32, message = "gqk,gkd->gqd"}> : () -> ()
    %cst_42 = arith.constant dense<0.000000e+00> : vector<2x16x4xf32>
    %142 = tpu.matmul %141, %129, %cst_42 {dimension_numbers = #tpu.dot_dimension_numbers<[2], [1], [1], [2], [0, 0, 0, 1, 1, 2], [0], [0]>} : vector<2x16x16xbf16>, vector<2x16x4xbf16>, vector<2x16x4xf32> -> vector<2x16x4xf32>
    "tpu.trace_stop"() : () -> ()
    %143 = vector.shape_cast %142 : vector<2x16x4xf32> to vector<32x4xf32>
    %144 = arith.truncf %143 : vector<32x4xf32> to vector<32x4xbf16>
    %c4 = arith.constant 4 : index
    %c0_43 = arith.constant 0 : index
    %c0_44 = arith.constant 0 : index
    %145 = vector.load %arg5[%c4, %c0_43, %c0_44] : memref<8x4x128xbf16, #tpu.memory_space<vmem>>, vector<1x4x128xbf16>
    %146 = vector.shape_cast %145 : vector<1x4x128xbf16> to vector<4x128xbf16>
    %cst_45 = arith.constant dense<0.000000e+00> : vector<32x128xf32>
    %147 = tpu.matmul %144, %146, %cst_45 {dimension_numbers = #tpu.dot_dimension_numbers<[1], [0], [0], [1], [0, 0, 1, 1], [], []>} : vector<32x4xbf16>, vector<4x128xbf16>, vector<32x128xf32> -> vector<32x128xf32>
    %148 = arith.addf %120, %147 : vector<32x128xf32>
    %149 = vector.extract_strided_slice %3 {offsets = [0, 20], sizes = [32, 4], strides = [1, 1]} : vector<32x128xf32> to vector<32x4xf32>
    %150 = vector.shape_cast %149 : vector<32x4xf32> to vector<2x16x4xf32>
    %151 = arith.truncf %150 : vector<2x16x4xf32> to vector<2x16x4xbf16>
    %152 = vector.extract_strided_slice %5 {offsets = [0, 20], sizes = [32, 4], strides = [1, 1]} : vector<32x128xf32> to vector<32x4xf32>
    %153 = vector.shape_cast %152 : vector<32x4xf32> to vector<2x16x4xf32>
    %154 = arith.truncf %153 : vector<2x16x4xf32> to vector<2x16x4xbf16>
    %155 = vector.extract_strided_slice %7 {offsets = [0, 20], sizes = [32, 4], strides = [1, 1]} : vector<32x128xf32> to vector<32x4xf32>
    %156 = vector.shape_cast %155 : vector<32x4xf32> to vector<2x16x4xf32>
    %157 = arith.truncf %156 : vector<2x16x4xf32> to vector<2x16x4xbf16>
    "tpu.trace_start"() <{level = 10 : i32, message = "gqd,gkd->gqk"}> : () -> ()
    %cst_46 = arith.constant dense<0.000000e+00> : vector<2x16x16xf32>
    %158 = tpu.matmul %151, %154, %cst_46 {dimension_numbers = #tpu.dot_dimension_numbers<[2], [2], [1], [1], [0, 0, 0, 1, 1, 1], [0], [0]>} : vector<2x16x4xbf16>, vector<2x16x4xbf16>, vector<2x16x16xf32> -> vector<2x16x16xf32>
    "tpu.trace_stop"() : () -> ()
    %cst_47 = arith.constant dense<0xFF800000> : vector<2x16xf32>
    %159 = vector.multi_reduction <maximumf>, %158, %cst_47 [2] : vector<2x16x16xf32> to vector<2x16xf32>
    %160 = vector.shape_cast %159 : vector<2x16xf32> to vector<2x16x1xf32>
    %161 = vector.broadcast %160 : vector<2x16x1xf32> to vector<2x16x16xf32>
    %162 = arith.subf %158, %161 : vector<2x16x16xf32>
    %163 = math.exp %162 : vector<2x16x16xf32>
    %cst_48 = arith.constant dense<0.000000e+00> : vector<2x16xf32>
    %164 = vector.multi_reduction <add>, %163, %cst_48 [2] : vector<2x16x16xf32> to vector<2x16xf32>
    %165 = vector.shape_cast %164 : vector<2x16xf32> to vector<2x16x1xf32>
    %166 = tpu.reciprocal %165 {approx = true} : vector<2x16x1xf32> -> vector<2x16x1xf32>
    %167 = vector.broadcast %166 : vector<2x16x1xf32> to vector<2x16x16xf32>
    %168 = arith.mulf %163, %167 : vector<2x16x16xf32>
    %169 = arith.truncf %168 : vector<2x16x16xf32> to vector<2x16x16xbf16>
    "tpu.trace_start"() <{level = 10 : i32, message = "gqk,gkd->gqd"}> : () -> ()
    %cst_49 = arith.constant dense<0.000000e+00> : vector<2x16x4xf32>
    %170 = tpu.matmul %169, %157, %cst_49 {dimension_numbers = #tpu.dot_dimension_numbers<[2], [1], [1], [2], [0, 0, 0, 1, 1, 2], [0], [0]>} : vector<2x16x16xbf16>, vector<2x16x4xbf16>, vector<2x16x4xf32> -> vector<2x16x4xf32>
    "tpu.trace_stop"() : () -> ()
    %171 = vector.shape_cast %170 : vector<2x16x4xf32> to vector<32x4xf32>
    %172 = arith.truncf %171 : vector<32x4xf32> to vector<32x4xbf16>
    %c5 = arith.constant 5 : index
    %c0_50 = arith.constant 0 : index
    %c0_51 = arith.constant 0 : index
    %173 = vector.load %arg5[%c5, %c0_50, %c0_51] : memref<8x4x128xbf16, #tpu.memory_space<vmem>>, vector<1x4x128xbf16>
    %174 = vector.shape_cast %173 : vector<1x4x128xbf16> to vector<4x128xbf16>
    %cst_52 = arith.constant dense<0.000000e+00> : vector<32x128xf32>
    %175 = tpu.matmul %172, %174, %cst_52 {dimension_numbers = #tpu.dot_dimension_numbers<[1], [0], [0], [1], [0, 0, 1, 1], [], []>} : vector<32x4xbf16>, vector<4x128xbf16>, vector<32x128xf32> -> vector<32x128xf32>
    %176 = arith.addf %148, %175 : vector<32x128xf32>
    %177 = vector.extract_strided_slice %3 {offsets = [0, 24], sizes = [32, 4], strides = [1, 1]} : vector<32x128xf32> to vector<32x4xf32>
    %178 = vector.shape_cast %177 : vector<32x4xf32> to vector<2x16x4xf32>
    %179 = arith.truncf %178 : vector<2x16x4xf32> to vector<2x16x4xbf16>
    %180 = vector.extract_strided_slice %5 {offsets = [0, 24], sizes = [32, 4], strides = [1, 1]} : vector<32x128xf32> to vector<32x4xf32>
    %181 = vector.shape_cast %180 : vector<32x4xf32> to vector<2x16x4xf32>
    %182 = arith.truncf %181 : vector<2x16x4xf32> to vector<2x16x4xbf16>
    %183 = vector.extract_strided_slice %7 {offsets = [0, 24], sizes = [32, 4], strides = [1, 1]} : vector<32x128xf32> to vector<32x4xf32>
    %184 = vector.shape_cast %183 : vector<32x4xf32> to vector<2x16x4xf32>
    %185 = arith.truncf %184 : vector<2x16x4xf32> to vector<2x16x4xbf16>
    "tpu.trace_start"() <{level = 10 : i32, message = "gqd,gkd->gqk"}> : () -> ()
    %cst_53 = arith.constant dense<0.000000e+00> : vector<2x16x16xf32>
    %186 = tpu.matmul %179, %182, %cst_53 {dimension_numbers = #tpu.dot_dimension_numbers<[2], [2], [1], [1], [0, 0, 0, 1, 1, 1], [0], [0]>} : vector<2x16x4xbf16>, vector<2x16x4xbf16>, vector<2x16x16xf32> -> vector<2x16x16xf32>
    "tpu.trace_stop"() : () -> ()
    %cst_54 = arith.constant dense<0xFF800000> : vector<2x16xf32>
    %187 = vector.multi_reduction <maximumf>, %186, %cst_54 [2] : vector<2x16x16xf32> to vector<2x16xf32>
    %188 = vector.shape_cast %187 : vector<2x16xf32> to vector<2x16x1xf32>
    %189 = vector.broadcast %188 : vector<2x16x1xf32> to vector<2x16x16xf32>
    %190 = arith.subf %186, %189 : vector<2x16x16xf32>
    %191 = math.exp %190 : vector<2x16x16xf32>
    %cst_55 = arith.constant dense<0.000000e+00> : vector<2x16xf32>
    %192 = vector.multi_reduction <add>, %191, %cst_55 [2] : vector<2x16x16xf32> to vector<2x16xf32>
    %193 = vector.shape_cast %192 : vector<2x16xf32> to vector<2x16x1xf32>
    %194 = tpu.reciprocal %193 {approx = true} : vector<2x16x1xf32> -> vector<2x16x1xf32>
    %195 = vector.broadcast %194 : vector<2x16x1xf32> to vector<2x16x16xf32>
    %196 = arith.mulf %191, %195 : vector<2x16x16xf32>
    %197 = arith.truncf %196 : vector<2x16x16xf32> to vector<2x16x16xbf16>
    "tpu.trace_start"() <{level = 10 : i32, message = "gqk,gkd->gqd"}> : () -> ()
    %cst_56 = arith.constant dense<0.000000e+00> : vector<2x16x4xf32>
    %198 = tpu.matmul %197, %185, %cst_56 {dimension_numbers = #tpu.dot_dimension_numbers<[2], [1], [1], [2], [0, 0, 0, 1, 1, 2], [0], [0]>} : vector<2x16x16xbf16>, vector<2x16x4xbf16>, vector<2x16x4xf32> -> vector<2x16x4xf32>
    "tpu.trace_stop"() : () -> ()
    %199 = vector.shape_cast %198 : vector<2x16x4xf32> to vector<32x4xf32>
    %200 = arith.truncf %199 : vector<32x4xf32> to vector<32x4xbf16>
    %c6 = arith.constant 6 : index
    %c0_57 = arith.constant 0 : index
    %c0_58 = arith.constant 0 : index
    %201 = vector.load %arg5[%c6, %c0_57, %c0_58] : memref<8x4x128xbf16, #tpu.memory_space<vmem>>, vector<1x4x128xbf16>
    %202 = vector.shape_cast %201 : vector<1x4x128xbf16> to vector<4x128xbf16>
    %cst_59 = arith.constant dense<0.000000e+00> : vector<32x128xf32>
    %203 = tpu.matmul %200, %202, %cst_59 {dimension_numbers = #tpu.dot_dimension_numbers<[1], [0], [0], [1], [0, 0, 1, 1], [], []>} : vector<32x4xbf16>, vector<4x128xbf16>, vector<32x128xf32> -> vector<32x128xf32>
    %204 = arith.addf %176, %203 : vector<32x128xf32>
    %205 = vector.extract_strided_slice %3 {offsets = [0, 28], sizes = [32, 4], strides = [1, 1]} : vector<32x128xf32> to vector<32x4xf32>
    %206 = vector.shape_cast %205 : vector<32x4xf32> to vector<2x16x4xf32>
    %207 = arith.truncf %206 : vector<2x16x4xf32> to vector<2x16x4xbf16>
    %208 = vector.extract_strided_slice %5 {offsets = [0, 28], sizes = [32, 4], strides = [1, 1]} : vector<32x128xf32> to vector<32x4xf32>
    %209 = vector.shape_cast %208 : vector<32x4xf32> to vector<2x16x4xf32>
    %210 = arith.truncf %209 : vector<2x16x4xf32> to vector<2x16x4xbf16>
    %211 = vector.extract_strided_slice %7 {offsets = [0, 28], sizes = [32, 4], strides = [1, 1]} : vector<32x128xf32> to vector<32x4xf32>
    %212 = vector.shape_cast %211 : vector<32x4xf32> to vector<2x16x4xf32>
    %213 = arith.truncf %212 : vector<2x16x4xf32> to vector<2x16x4xbf16>
    "tpu.trace_start"() <{level = 10 : i32, message = "gqd,gkd->gqk"}> : () -> ()
    %cst_60 = arith.constant dense<0.000000e+00> : vector<2x16x16xf32>
    %214 = tpu.matmul %207, %210, %cst_60 {dimension_numbers = #tpu.dot_dimension_numbers<[2], [2], [1], [1], [0, 0, 0, 1, 1, 1], [0], [0]>} : vector<2x16x4xbf16>, vector<2x16x4xbf16>, vector<2x16x16xf32> -> vector<2x16x16xf32>
    "tpu.trace_stop"() : () -> ()
    %cst_61 = arith.constant dense<0xFF800000> : vector<2x16xf32>
    %215 = vector.multi_reduction <maximumf>, %214, %cst_61 [2] : vector<2x16x16xf32> to vector<2x16xf32>
    %216 = vector.shape_cast %215 : vector<2x16xf32> to vector<2x16x1xf32>
    %217 = vector.broadcast %216 : vector<2x16x1xf32> to vector<2x16x16xf32>
    %218 = arith.subf %214, %217 : vector<2x16x16xf32>
    %219 = math.exp %218 : vector<2x16x16xf32>
    %cst_62 = arith.constant dense<0.000000e+00> : vector<2x16xf32>
    %220 = vector.multi_reduction <add>, %219, %cst_62 [2] : vector<2x16x16xf32> to vector<2x16xf32>
    %221 = vector.shape_cast %220 : vector<2x16xf32> to vector<2x16x1xf32>
    %222 = tpu.reciprocal %221 {approx = true} : vector<2x16x1xf32> -> vector<2x16x1xf32>
    %223 = vector.broadcast %222 : vector<2x16x1xf32> to vector<2x16x16xf32>
    %224 = arith.mulf %219, %223 : vector<2x16x16xf32>
    %225 = arith.truncf %224 : vector<2x16x16xf32> to vector<2x16x16xbf16>
    "tpu.trace_start"() <{level = 10 : i32, message = "gqk,gkd->gqd"}> : () -> ()
    %cst_63 = arith.constant dense<0.000000e+00> : vector<2x16x4xf32>
    %226 = tpu.matmul %225, %213, %cst_63 {dimension_numbers = #tpu.dot_dimension_numbers<[2], [1], [1], [2], [0, 0, 0, 1, 1, 2], [0], [0]>} : vector<2x16x16xbf16>, vector<2x16x4xbf16>, vector<2x16x4xf32> -> vector<2x16x4xf32>
    "tpu.trace_stop"() : () -> ()
    %227 = vector.shape_cast %226 : vector<2x16x4xf32> to vector<32x4xf32>
    %228 = arith.truncf %227 : vector<32x4xf32> to vector<32x4xbf16>
    %c7 = arith.constant 7 : index
    %c0_64 = arith.constant 0 : index
    %c0_65 = arith.constant 0 : index
    %229 = vector.load %arg5[%c7, %c0_64, %c0_65] : memref<8x4x128xbf16, #tpu.memory_space<vmem>>, vector<1x4x128xbf16>
    %230 = vector.shape_cast %229 : vector<1x4x128xbf16> to vector<4x128xbf16>
    %cst_66 = arith.constant dense<0.000000e+00> : vector<32x128xf32>
    %231 = tpu.matmul %228, %230, %cst_66 {dimension_numbers = #tpu.dot_dimension_numbers<[1], [0], [0], [1], [0, 0, 1, 1], [], []>} : vector<32x4xbf16>, vector<4x128xbf16>, vector<32x128xf32> -> vector<32x128xf32>
    %232 = arith.addf %204, %231 : vector<32x128xf32>
    %c0_67 = arith.constant 0 : index
    %c0_68 = arith.constant 0 : index
    %233 = vector.load %arg6[%c0_67, %c0_68] : memref<1x128xf32, #tpu.memory_space<vmem>>, vector<1x128xf32>
    %234 = vector.broadcast %233 : vector<1x128xf32> to vector<32x128xf32>
    %235 = arith.addf %232, %234 : vector<32x128xf32>
    %c0_69 = arith.constant 0 : index
    %c0_70 = arith.constant 0 : index
    %236 = vector.load %arg7[%c0_69, %c0_70] : memref<32x128xf32, #tpu.memory_space<vmem>>, vector<32x128xf32>
    tpu.vector_store %arg7[%c0_69, %c0_70], %235 {strides = array<i32>} : memref<32x128xf32, #tpu.memory_space<vmem>>, vector<32x128xf32>,
    return
  }
  func.func @transform_0(%arg0: i32) -> (i32, i32) {
    %c0_i32 = arith.constant 0 : i32
    %c0_i32_0 = arith.constant 0 : i32
    return %arg0, %c0_i32 : i32, i32
  }
  func.func @transform_1(%arg0: i32) -> (i32, i32) {
    %c0_i32 = arith.constant 0 : i32
    %c0_i32_0 = arith.constant 0 : i32
    %c0_i32_1 = arith.constant 0 : i32
    return %c0_i32, %c0_i32_0 : i32, i32
  }
  func.func @transform_2(%arg0: i32) -> (i32, i32) {
    %c0_i32 = arith.constant 0 : i32
    %c0_i32_0 = arith.constant 0 : i32
    %c0_i32_1 = arith.constant 0 : i32
    return %c0_i32, %c0_i32_0 : i32, i32
  }
  func.func @transform_3(%arg0: i32) -> (i32, i32) {
    %c0_i32 = arith.constant 0 : i32
    %c0_i32_0 = arith.constant 0 : i32
    %c0_i32_1 = arith.constant 0 : i32
    return %c0_i32, %c0_i32_0 : i32, i32
  }
  func.func @transform_4(%arg0: i32) -> (i32, i32, i32) {
    %c0_i32 = arith.constant 0 : i32
    %c0_i32_0 = arith.constant 0 : i32
    %c0_i32_1 = arith.constant 0 : i32
    %c0_i32_2 = arith.constant 0 : i32
    return %c0_i32, %c0_i32_0, %c0_i32_1 : i32, i32, i32
  }
  func.func @transform_5(%arg0: i32) -> (i32, i32) {
    %c0_i32 = arith.constant 0 : i32
    %c0_i32_0 = arith.constant 0 : i32
    %c0_i32_1 = arith.constant 0 : i32
    return %c0_i32, %c0_i32_0 : i32, i32
  }
  func.func @transform_6(%arg0: i32) -> (i32, i32) {
    %c0_i32 = arith.constant 0 : i32
    %c0_i32_0 = arith.constant 0 : i32
    return %arg0, %c0_i32 : i32, i32
  }
}

</mosaic_0001>

<bundles_post_ra>
// kernel: tpu_custom_call.1
= control target key start
LH: loop header
LB: loop body
LE: loop exit
PB: predicated region body
PF: predicated region fallthrough
CT: control target
= control target key end

     0   :  { %11 = vsyncpa [#allocation3], 0  ;;  %s5025_s0 = inlined_call_operand.hbm [shape: f32[128,128], index: 0, kind: input, shape index: {}]   ;;  %s5026_s1 = inlined_call_operand.hbm [shape: bf16[128,128], index: 1, kind: input, shape index: {}]   ;;  %s5027_s2 = inlined_call_operand.hbm [shape: bf16[128,128], index: 2, kind: input, shape index: {}]   ;;  %s5028_s3 = inlined_call_operand.hbm [shape: bf16[128,128], index: 3, kind: input, shape index: {}]   ;;  %s5029_s4 = inlined_call_operand.hbm [shape: bf16[8,4,128], index: 4, kind: input, shape index: {}]   ;;  %s5030_s5 = inlined_call_operand.vmem [shape: f32[1,128], index: 5, kind: input, shape index: {}]   ;;  %s5031_s6 = inlined_call_operand.hbm [shape: f32[128,128], index: 6, kind: output, shape index: {}]  }
   0x1   :  { %13 = vsyncpa [#allocation3 + $0x1], 0 }
   0x2   :  { %14 = vsyncpa [#allocation6], 0 }
   0x3   :  { %15 = vsyncpa [#allocation9], 0 }
   0x4   :  { %16 = vsyncpa [#allocation4], 0 }
   0x5   :  { %18 = vsyncpa [#allocation4 + $0x1], 0  ;;  %s4355_s21 = smov 0   ;;  %s4357_s22 = smov 0  }
   0x6   :  { %s4359_s23 = smov 0   ;;  %s4361_s24 = smov 0  }
   0x7 LB: > { %s4376_s25 = sadd.s32 4294967295, %s4295_s24   ;;  %s3272_s26 = sadd.s32 4294967294, %s4295_s24   ;;  %s4295_s24 = sphi %s4361_s24, %s5053_s24   ;;  %s4291_s23 = sphi %s4359_s23, %s5052_s23   ;;  %s4287_s22 = sphi %s4357_s22, %s5051_s22   ;;  %s4283_s21 = sphi %s4355_s21, %s5050_s21  }
   0x8   : > { %p44_p0 = scmp.ne.s32.totalorder %s4287_s22, %s4283_s21  ;;  %p5032_p1 = scmp.eq.s32.totalorder %s4376_s25, 0 }
   0x9   : > { %p179_p3 = scmp.eq.s32.totalorder %s3272_s26, 3  ;;  %p3273_p5 = scmp.ge.s32.totalorder %s4295_s24, 1 }
   0xa   : > { %p4385_p4 = por %p5032_p1, %p44_p0  ;;  %p186_p7 = scmp.lt.s32.totalorder %s4295_s24, 5 }
   0xb   : > { %p4390_p6 = por %p179_p3, %p44_p0  ;;  %s4297_s30 = smov [#allocation5]  }
   0xc   : > { %s5035_s27 = scalar_select %p4385_p4, 1, 0 }
   0xd   : > { %s5036_s28 = scalar_select %p4390_p6, 1, 0 }
   0xe   : > { %p4395_p8 = pnand %p3273_p5, %p186_p7  ;;  %s198_s7 = sshll.u32 %s4297_s30, 4  ;;  %s4399_s7 = int_to_ptr.vmem [resolvable:$true] %s198_s7 }
   0xf   : > { %s4298_s9 = smov [#allocation8]   ;;  %s4299_s11 = smov [#allocation7]  }
  0x10   : > { %s5037_s29 = scalar_select %p4395_p8, 1, 0 }
  0x11   : > { %p3843_p9 = pneg %p4395_p8  ;;  %s224_s10 = sshll.u32 %s4298_s9, 4  ;;  %s4409_s10 = int_to_ptr.vmem [resolvable:$true] %s224_s10 }
  0x12   : > { %s4411_s12 = sshll.u32 %s4299_s11, 4  ;;  %s4079_s15 = scalar_lea.hbm %s5026_s1, 1024  ;;  %s212_s12 = int_to_ptr.vmem [resolvable:$true] %s4411_s12 }
  0x13   : > { %p4405_p10 = pnand %p3843_p9, %p5032_p1  ;;  %p4080_p11 = scmp.ne.s32.totalorder %s5026_s1, %s4079_s15 }
  0x14   : > { %p4086_p3 = scmp.lt.u32.totalorder %s4079_s15, %s5026_s1 }
  0x15   : > { %p4421_p12 = pneg %p4405_p10 }
  0x17   : > { %p4082_p13 = pnand %p4421_p12, %p4080_p11 }
  0x19   : > { %p4083_p0 = pneg %p4082_p13 }
  0x1b   : > { %p4088_p5 = pnand %p4086_p3, %p4083_p0 }
  0x1d   : > { %4091 = shalt.err (!%p4088_p5)
}
  0x1e   : > { %s4092_s26 = scalar_lea.vmem %s4399_s7, 1024  ;;  %p4100_p2 = scmp.lt.s32.totalorder %s4399_s7, %s4399_s7 }
  0x1f   : > { %p4093_p7 = scmp.ne.s32.totalorder %s4399_s7, %s4092_s26  ;;  %p4101_p6 = scmp.lt.s32.totalorder %s4092_s26, %s4092_s26 }
  0x21   : > { %p4095_p9 = pnand %p4093_p7, %p4421_p12  ;;  %p4102_p11 = por %p4101_p6, %p4100_p2 }
  0x23   : > { %p4096_p1 = pneg %p4095_p9 }
  0x25   : > { %p4103_p13 = pnand %p4102_p11, %p4096_p1 }
  0x27   : > { %4106 = shalt.err (!%p4103_p13)
}
  0x28   : > { %s4300_s30 = smov 64   ;;  %s4301_s9 = smov 4  }
  0x29   : > { %3846 = dma.hbm_to_vmem [thread:$0]  (!%p4405_p10), %s5026_s1, 1024, %s4399_s7, [#allocation6], %s4300_s30, %s4300_s30, %s4301_s9  }
  0x2a   : > { %s4107_s16 = scalar_lea.hbm %s5028_s3, 1024 }
  0x2b   : > { %p4108_p1 = scmp.ne.s32.totalorder %s5028_s3, %s4107_s16  ;;  %p4114_p0 = scmp.lt.u32.totalorder %s4107_s16, %s5028_s3 }
  0x2d   : > { %p4110_p2 = pnand %p4108_p1, %p4421_p12 }
  0x2f   : > { %p4111_p6 = pneg %p4110_p2 }
  0x31   : > { %p4116_p3 = pnand %p4114_p0, %p4111_p6 }
  0x33   : > { %4119 = shalt.err (!%p4116_p3)
}
  0x34   : > { %s4120_s7 = scalar_lea.vmem %s4409_s10, 1024  ;;  %p4128_p11 = scmp.lt.s32.totalorder %s4409_s10, %s4409_s10 }
  0x35   : > { %p4121_p5 = scmp.ne.s32.totalorder %s4409_s10, %s4120_s7  ;;  %p4129_p13 = scmp.lt.s32.totalorder %s4120_s7, %s4120_s7 }
  0x37   : > { %p4123_p7 = pnand %p4121_p5, %p4421_p12  ;;  %p4130_p1 = por %p4129_p13, %p4128_p11 }
  0x39   : > { %p4124_p9 = pneg %p4123_p7 }
  0x3b   : > { %p4131_p2 = pnand %p4130_p1, %p4124_p9 }
  0x3d   : > { %4134 = shalt.err (!%p4131_p2)
}
  0x3e   : > { %3852 = dma.hbm_to_vmem [thread:$0]  (!%p4405_p10), %s5028_s3, 1024, %s4409_s10, [#allocation9], %s4300_s30, %s4300_s30, %s4301_s9  }
  0x3f   : > { %s4135_s16 = scalar_lea.hbm %s5027_s2, 1024 }
  0x40   : > { %p4136_p6 = scmp.ne.s32.totalorder %s5027_s2, %s4135_s16  ;;  %p4142_p5 = scmp.lt.u32.totalorder %s4135_s16, %s5027_s2 }
  0x42   : > { %p4138_p0 = pnand %p4136_p6, %p4421_p12 }
  0x44   : > { %p4139_p3 = pneg %p4138_p0 }
  0x46   : > { %p4144_p7 = pnand %p4142_p5, %p4139_p3 }
  0x48   : > { %4147 = shalt.err (!%p4144_p7)
}
  0x49   : > { %s4148_s7 = scalar_lea.vmem %s212_s12, 1024  ;;  %p4156_p1 = scmp.lt.s32.totalorder %s212_s12, %s212_s12 }
  0x4a   : > { %p4149_p9 = scmp.ne.s32.totalorder %s212_s12, %s4148_s7  ;;  %p4157_p2 = scmp.lt.s32.totalorder %s4148_s7, %s4148_s7 }
  0x4c   : > { %p4151_p11 = pnand %p4149_p9, %p4421_p12  ;;  %p4158_p4 = por %p4157_p2, %p4156_p1 }
  0x4e   : > { %p4152_p13 = pneg %p4151_p11 }
  0x50   : > { %p4159_p8 = pnand %p4158_p4, %p4152_p13 }
  0x52   : > { %4162 = shalt.err (!%p4159_p8)
}
  0x53   : > { %3849 = dma.hbm_to_vmem [thread:$0]  (!%p4405_p10), %s5027_s2, 1024, %s212_s12, [#allocation6], %s4300_s30, %s4300_s30, %s4301_s9  }
  0x54   : > { %s4302_s13 = smov [#allocation10]   ;;  %s4163_s17 = scalar_lea.hbm %s5029_s4, 256 }
  0x55   : > { %s237_s14 = sshll.u32 %s4302_s13, 4  ;;  %p4164_p4 = scmp.ne.s32.totalorder %s5029_s4, %s4163_s17  ;;  %s238_s14 = int_to_ptr.vmem [resolvable:$true] %s237_s14 }
  0x56   : > { %p4170_p0 = scmp.lt.u32.totalorder %s4163_s17, %s5029_s4 }
  0x57   : > { %p4166_p8 = pnand %p4164_p4, %p4421_p12 }
  0x59   : > { %p4167_p6 = pneg %p4166_p8 }
  0x5b   : > { %p4172_p3 = pnand %p4170_p0, %p4167_p6 }
  0x5d   : > { %4175 = shalt.err (!%p4172_p3)
}
  0x5e   : > { %s4176_s12 = scalar_lea.vmem %s238_s14, 256  ;;  %p4184_p11 = scmp.lt.s32.totalorder %s238_s14, %s238_s14 }
  0x5f   : > { %p4177_p5 = scmp.ne.s32.totalorder %s238_s14, %s4176_s12  ;;  %p4185_p13 = scmp.lt.s32.totalorder %s4176_s12, %s4176_s12 }
  0x61   : > { %p4179_p7 = pnand %p4177_p5, %p4421_p12  ;;  %p4186_p1 = por %p4185_p13, %p4184_p11 }
  0x63   : > { %p4180_p9 = pneg %p4179_p7 }
  0x65   : > { %p4187_p2 = pnand %p4186_p1, %p4180_p9 }
  0x67   : > { %4190 = shalt.err (!%p4187_p2)
}
  0x68   : > { %s4303_s30 = smov 32   ;;  %s4304_s18 = smov 2  }
  0x69   : > { %3855 = dma.hbm_to_vmem [thread:$0]  (!%p4405_p10), %s5029_s4, 256, %s238_s14, [#allocation9], %s4303_s30, %s4303_s30, %s4304_s18  }
  0x6a   : > { %s4512_s11 = sadd.s32 1, %s4295_s24   ;;  %s31_s15 = sadd.s32 1, %s4291_s23 }
  0x6b   : > { %s28_s13 = ssub.s32 %s4295_s24, %s4512_s11  ;;  %p38_p4 = scmp.ne.s32.totalorder %s4291_s23, %s4287_s22 }
  0x6c   : > { %p29_p12 = scmp.eq.s32.totalorder %s28_s13, 0  ;;  %p39_p8 = scmp.eq.s32.totalorder %s4295_s24, 0 }
  0x6d   : > { %p5040_p0 = scmp.eq.s32.totalorder %s4376_s25, 3  ;;  %p3868_p5 = scmp.lt.s32.totalorder %s4295_s24, 4 }
  0x6e   : > { %s4521_s16 = scalar_select %p29_p12, %s4291_s23, %s31_s15  }
  0x6f   : > { %p40_p6 = por %p39_p8, %p38_p4  ;;  %p4525_p3 = por %p5040_p0, %p38_p4 }
  0x70   : > { %s254_s8 = sand.u32 1, %s4291_s23   ;;  %s3367_s14 = sshll.u32 %s4295_s24, 9 }
  0x71   : > { %s3279_s19 = sshll.u32 %s254_s8, 5  ;;  %s4535_s7 = scalar_lea.hbm %s5025_s0, %s3367_s14 }
  0x72   : > { %s258_s12 = scalar_lea.vmem [#allocation2], %s3279_s19  ;;  %p4539_p10 = pnand %p3868_p5, %p40_p6 }
  0x73   : > { %s265_s30 = sshll.u32 %s258_s12, 4  ;;  %s4543_s9 = scalar_lea.sflag [#allocation3], %s254_s8  ;;  %s4537_s30 = int_to_ptr.vmem [resolvable:$true] %s265_s30 }
  0x74   : > { %s4191_s10 = scalar_lea.hbm %s4535_s7, 512  ;;  %p4193_p9 = pneg %p4539_p10 }
  0x75   : > { %p4192_p7 = scmp.ne.s32.totalorder %s4535_s7, %s4191_s10  ;;  %s4196_s19 = scalar_lea.hbm %s5025_s0, 2048 }
  0x76   : > { %p4197_p1 = scmp.lt.u32.totalorder %s4535_s7, %s5025_s0  ;;  %p4198_p2 = scmp.lt.u32.totalorder %s4196_s19, %s4191_s10 }
  0x77   : > { %p4194_p11 = pnand %p4193_p9, %p4192_p7  ;;  %p4200_p4 = scmp.lt.u32.totalorder %s4191_s10, %s4535_s7 }
  0x78   : > { %p4199_p12 = por %p4198_p2, %p4197_p1 }
  0x79   : > { %p4195_p13 = pneg %p4194_p11 }
  0x7a   : > { %p4201_p8 = por %p4200_p4, %p4199_p12 }
  0x7c   : > { %p4202_p6 = pnand %p4201_p8, %p4195_p13 }
  0x7e   : > { %4205 = shalt.err (!%p4202_p6)
}
  0x7f   : > { %s4206_s8 = scalar_lea.vmem %s4537_s30, 512  ;;  %s4305_s26 = smov [#allocation2]  }
  0x80   : > { %p4207_p0 = scmp.ne.s32.totalorder %s4537_s30, %s4206_s8  ;;  %s4211_s12 = sshll.u32 %s4305_s26, 4  ;;  %s4212_s12 = int_to_ptr.vmem [resolvable:$false] %s4211_s12 }
  0x81   : > { %s4213_s13 = scalar_lea.vmem %s4212_s12, 1024  ;;  %p4214_p11 = scmp.lt.s32.totalorder %s4537_s30, %s4212_s12 }
  0x82   : > { %p4209_p5 = pnand %p4207_p0, %p4193_p9  ;;  %p4215_p1 = scmp.lt.s32.totalorder %s4213_s13, %s4206_s8 }
  0x84   : > { %p4210_p7 = pneg %p4209_p5  ;;  %p4216_p2 = por %p4215_p1, %p4214_p11 }
  0x86   : > { %p4217_p12 = pnand %p4216_p2, %p4210_p7 }
  0x88   : > { %4220 = shalt.err (!%p4217_p12)
}
  0x89   : > { %s4306_s10 = smov 128   ;;  %s4307_s15 = smov 8  }
  0x8a   : > { %3859 = dma.hbm_to_vmem [thread:$0]  (!%p4539_p10), %s4535_s7, 512, %s4537_s30, %s4543_s9, %s4306_s10, %s4306_s10, %s4307_s15  }
  0x8b   : > { %p5043_p9 = scmp.ne.s32.totalorder %s5037_s29, 0 }
  0x8c   : > { %s4574_s19 = sand.u32 (!%p5043_p9), 1, %s4287_s22   ;;  %p5044_p13 = scmp.ne.s32.totalorder (!%p5043_p9), %s5035_s27, 0 }
  0x8d   : > { %277 = sbr.rel (%p5043_p9) target bundleno = 5476 (0x1564), region = 44  ;;  %s3283_s14 = sshll.u32 (!%p5043_p9), %s4574_s19, 5 }
  0x8e   : > { %s280_s20 = scalar_lea.sflag (!%p5043_p9), [#allocation3], %s4574_s19  ;;  %s4580_s8 = scalar_lea.vmem (!%p5043_p9), [#allocation2], %s3283_s14 }
  0x94   : > { %4266 = dma.done.wait (%p5044_p13), %s280_s20, 512  }
  0x95   : > { %4268 = vsyncadd (%p5044_p13), %s280_s20, 4294966784  ;;  %p5045_p10 = scmp.eq.s32.totalorder %s4376_s25, 0 }
  0x97   : > { %4270 = dma.done.wait (%p5045_p10), [#allocation6], 2048   ;;  %p5046_p4 = pmov %p5045_p10 }
  0x99   : > { %4272 = vsyncadd (%p5046_p4), [#allocation6], 4294965248  ;;  %p5047_p8 = pmov %p5046_p4 }
  0x9a   : > { %p5048_p6 = pmov %p5046_p4 }
  0x9b   : > { %4274 = dma.done.wait (%p5047_p8), [#allocation9], 1280  }
  0x9c   : > { %4276 = vsyncadd (%p5048_p6), [#allocation9], 4294966016  ;;  %v3927_v0 = vld [vmem:[#allocation7] sm:$0xff]   ;;  %v3928_v1 = vld [vmem:[#allocation7 + $0x8] sm:$0xff]   ;;  %v4308_v22 = vmov 0.0   ;;  %vm4309_vm0 = vmmov 0  }
  0x9d   : > { %3507 = vmatprep.subr.bf16.mxu1 %v3927_v0  ;;  %v3929_v2 = vld [vmem:[#allocation5] sm:$0xff]   ;;  %v3930_v3 = vld [vmem:[#allocation7 + $0x10] sm:$0xff]   ;;  %v3931_v4 = vld [vmem:[#allocation5 + $0x8] sm:$0xff]   ;;  %vm682_vm1 = vcmask 31744   ;;  %vm777_vm2 = vcmask 130048   ;;  %s4310_s27 = smov 124  }
  0x9e   : > { %3508 = vmatpush3.bf16.msra.mxu1 %v3927_v0  ;;  %3487 = vmatprep.subr.bf16.mxu0 %v3929_v2  ;;  %v3933_v5 = vld [vmem:[#allocation5 + $0x10] sm:$0xff]   ;;  %v3932_v6 = vld [vmem:[#allocation7 + $0x18] sm:$0xff]   ;;  %v3934_v8 = vld [vmem:[#allocation7 + $0x20] sm:$0xff]   ;;  %s4311_s29 = smov 120   ;;  %vm1173_vm3 = vcmask 1041408   ;;  %s4312_s7 = smov 116  }
  0x9f   : > { %3509 = vmatprep.subr.bf16.mxu1 %v3928_v1  ;;  %3488 = vmatpush3.bf16.msra.mxu0 %v3929_v2  ;;  %v3935_v7 = vld [vmem:[#allocation5 + $0x18] sm:$0xff]   ;;  %v3937_v9 = vld [vmem:[#allocation5 + $0x20] sm:$0xff]   ;;  %v332_v11 = vld [vmem:[%s4580_s8 + $0x8] sm:$0xff]  ;;  %s4313_s30 = smov 112   ;;  %s4314_s18 = smov 108  }
  0xa0   : > { %3489 = vmatprep.subr.bf16.mxu0 %v3931_v4  ;;  %v331_v10 = vld [vmem:[%s4580_s8] sm:$0xff]  ;;  %v3936_v12 = vld [vmem:[#allocation7 + $0x28] sm:$0xff]   ;;  %v3938_v15 = vld [vmem:[#allocation7 + $0x30] sm:$0xff]   ;;  %s4315_s9 = smov 104   ;;  %s4316_s26 = smov 100  }
  0xa1   : > { %v335_v13 = vpack.c.bf16 %v332_v11, %v331_v10  ;;  %v3939_v14 = vld [vmem:[#allocation5 + $0x28] sm:$0xff]   ;;  %v3941_v16 = vld [vmem:[#allocation5 + $0x30] sm:$0xff]   ;;  %v3940_v17 = vld [vmem:[#allocation7 + $0x38] sm:$0xff]   ;;  %s327_s10 = scalar_lea.vmem [#allocation11], %s3283_s14  ;;  %s3368_s20 = sshll.u32 %s4376_s25, 9 }
  0xa2   : > { %3510 = vmatpush3.bf16.msra.mxu1 %v3928_v1  ;;  %v3942_v18 = vld [vmem:[#allocation5 + $0x38] sm:$0xff]   ;;  %v333_v19 = vld [vmem:[%s4580_s8 + $0x10] sm:$0xff]  ;;  %v3943_v37 = vld [vmem:[#allocation8] sm:$0xff]   ;;  %s3161_s15 = sshll.u32 %s327_s10, 4  ;;  %s4982_s14 = scalar_lea.hbm %s5031_s6, %s3368_s20  ;;  %s4977_s15 = int_to_ptr.vmem [resolvable:$true] %s3161_s15 }
  0xa3   : > { %3511 = vmatprep.subr.bf16.mxu1 %v3930_v3  ;;  %3490 = vmatpush3.bf16.msra.mxu0 %v3931_v4  ;;  %v334_v20 = vld [vmem:[%s4580_s8 + $0x18] sm:$0xff]  ;;  %v3944_v38 = vld [vmem:[#allocation8 + $0x8] sm:$0xff]   ;;  %v3945_v39 = vld [vmem:[#allocation8 + $0x10] sm:$0xff]   ;;  %s3148_s25 = scalar_lea.sflag [#allocation4], %s4574_s19 }
  0xa4   : > { %3491 = vmatprep.subr.bf16.mxu0 %v3933_v5  ;;  %3523 = vmatprep.mubr.bf16.mxu1 %v335_v13  ;;  %v336_v21 = vpack.c.bf16 %v334_v20, %v333_v19  ;;  %v3946_v40 = vld [vmem:[#allocation8 + $0x18] sm:$0xff]   ;;  %v3947_v41 = vld [vmem:[#allocation8 + $0x20] sm:$0xff]   ;;  %v3948_v42 = vld [vmem:[#allocation8 + $0x28] sm:$0xff]  }
  0xa5   : > { %3503 = vmatprep.mubr.bf16.mxu0 %v335_v13  ;;  %v3949_v43 = vld [vmem:[#allocation8 + $0x30] sm:$0xff]   ;;  %v3950_v44 = vld [vmem:[#allocation8 + $0x38] sm:$0xff]  }
  0xa6   : > { %3512 = vmatpush3.bf16.msra.mxu1 %v3930_v3 }
  0xa7   : > { %3513 = vmatprep.subr.bf16.mxu1 %v3932_v6  ;;  %3492 = vmatpush3.bf16.msra.mxu0 %v3933_v5 }
  0xa8   : > { %3493 = vmatprep.subr.bf16.mxu0 %v3935_v7 }
  0xaa   : > { %3514 = vmatpush3.bf16.msra.mxu1 %v3932_v6 }
  0xab   : > { %3515 = vmatprep.subr.bf16.mxu1 %v3934_v8  ;;  %3494 = vmatpush3.bf16.msra.mxu0 %v3935_v7 }
  0xac   : > { %3495 = vmatprep.subr.bf16.mxu0 %v3937_v9 }
  0xae   : > { %3516 = vmatpush3.bf16.msra.mxu1 %v3934_v8 }
  0xaf   : > { %3517 = vmatprep.subr.bf16.mxu1 %v3936_v12  ;;  %3496 = vmatpush3.bf16.msra.mxu0 %v3937_v9 }
  0xb0   : > { %3497 = vmatprep.subr.bf16.mxu0 %v3939_v14 }
  0xb2   : > { %3518 = vmatpush3.bf16.msra.mxu1 %v3936_v12 }
  0xb3   : > { %3519 = vmatprep.subr.bf16.mxu1 %v3938_v15  ;;  %3498 = vmatpush3.bf16.msra.mxu0 %v3939_v14 }
  0xb4   : > { %3499 = vmatprep.subr.bf16.mxu0 %v3941_v16 }
  0xb6   : > { %3520 = vmatpush3.bf16.msra.mxu1 %v3938_v15 }
  0xb7   : > { %3521 = vmatprep.subr.bf16.mxu1 %v3940_v17  ;;  %3500 = vmatpush3.bf16.msra.mxu0 %v3941_v16 }
  0xb8   : > { %3501 = vmatprep.subr.bf16.mxu0 %v3942_v18 }
  0xba   : > { %3522 = vmatpush3.bf16.msra.mxu1 %v3940_v17 }
  0xbb   : > { %3502 = vmatpush3.bf16.msra.mxu0 %v3942_v18  ;;  %3547 = vmatprep.subr.bf16.mxu1 %v4308_v22 }
  0xbc   : > { %3527 = vmatprep.subr.bf16.mxu0 %v3943_v37 }
  0xbd   : > { %3524 = vmatmul.mubr.bf16.vlgmr.msra.gmra.mrb[0].mxu1 %v336_v21 }
  0xbe   : > { %3504 = vmatmul.mubr.bf16.vlgmr.msra.gmra.mrb[0].mxu0 %v336_v21  ;;  %3549 = vmatprep.mubr.msk.bf16.mxu1 %vm4309_vm0, %v4308_v22 }
  0xbf   : > { %3543 = vmatprep.mubr.bf16.mxu0 %v335_v13  ;;  %3528 = vmatpush3.bf16.msra.mxu0 %v3943_v37 }
  0xc0   : > { %3529 = vmatprep.subr.bf16.mxu0 %v3944_v38 }
  0xc3   : > { %3530 = vmatpush3.bf16.msra.mxu0 %v3944_v38 }
  0xc4   : > { %3531 = vmatprep.subr.bf16.mxu0 %v3945_v39 }
  0xc7   : > { %3532 = vmatpush3.bf16.msra.mxu0 %v3945_v39 }
  0xc8   : > { %3533 = vmatprep.subr.bf16.mxu0 %v3946_v40 }
  0xcb   : > { %3534 = vmatpush3.bf16.msra.mxu0 %v3946_v40 }
  0xcc   : > { %3535 = vmatprep.subr.bf16.mxu0 %v3947_v41 }
  0xcf   : > { %3536 = vmatpush3.bf16.msra.mxu0 %v3947_v41 }
  0xd0   : > { %3537 = vmatprep.subr.bf16.mxu0 %v3948_v42 }
  0xd3   : > { %3538 = vmatpush3.bf16.msra.mxu0 %v3948_v42 }
  0xd4   : > { %3539 = vmatprep.subr.bf16.mxu0 %v3949_v43 }
  0xd7   : > { %3540 = vmatpush3.bf16.msra.mxu0 %v3949_v43 }
  0xd8   : > { %3541 = vmatprep.subr.bf16.mxu0 %v3950_v44 }
  0xdb   : > { %3542 = vmatpush3.bf16.msra.mxu0 %v3950_v44 }
  0xdc   : > { %3583 = vmatprep.subr.bf16.mxu0 %v4308_v22 }
  0xde   : > { %3544 = vmatmul.mubr.bf16.vlgmr.msra.gmra.mrb[4].mxu0 %v336_v21 }
  0xdf   : > { %3585 = vmatprep.mubr.msk.bf16.mxu0 %vm4309_vm0, %v4308_v22 }
 0x190   : > { %v3525_v23 = vpop.f32.mrb[0].mxu1 }
 0x191   : > { %v548_v24 = vpop.f32.mrb[1].mxu1  ;;  %v3505_v26 = vpop.f32.mrb[0].mxu0 }
 0x192   : > { %v3526_v25 = vpop.f32.mrb[2].mxu1  ;;  %v435_v29 = vpop.f32.mrb[1].mxu0 }
 0x193   : > { %v4601_v27 = vpack.c.bf16 %v3526_v25, %v3525_v23  ;;  %v551_v28 = vpop.f32.mrb[3].mxu1  ;;  %v3506_v31 = vpop.f32.mrb[2].mxu0 }
 0x194   : > { %v4603_v30 = vpack.c.bf16 %v551_v28, %v548_v24  ;;  %v4605_v32 = vpack.c.bf16 %v3506_v31, %v3505_v26  ;;  %v438_v33 = vpop.f32.mrb[3].mxu0 }
 0x195   : > { %v4609_v35 = vpack.c.bf16 %v438_v33, %v435_v29  ;;  %v734_v36 = vsel %vm682_vm1, %v4601_v27, 0 }
 0x196   : > { %v687_v34 = vsel %vm682_vm1, %v4603_v30, 0 }
 0x197   : > { %3548 = vmatpush3.bf16.xpose.msra.mxu1 %v687_v34 }
 0x198   : > { %3553 = vmatprep.subr.bf16.mxu1 %v4308_v22 }
 0x19e   : > { %3550 = vmatmul.mubr.msk.bf16.vlgmr.msra.gmra.mrb[4].mxu1 %vm682_vm1, %v4609_v35 }
 0x19f   : > { %3554 = vmatpush3.bf16.xpose.msra.mxu1 %v734_v36  ;;  %3555 = vmatprep.mubr.msk.bf16.mxu1 %vm4309_vm0, %v4308_v22 }
 0x1a0   : > { %3559 = vmatprep.subr.bf16.mxu1 %v4308_v22 }
 0x1a6   : > { %3556 = vmatmul.mubr.msk.bf16.vlgmr.msra.gmra.mrb[8].mxu1 %vm682_vm1, %v4605_v32 }
 0x1a7   : > { %3561 = vmatprep.mubr.msk.bf16.mxu1 %vm4309_vm0, %v4308_v22 }
 0x1b1   : > { %v3545_v13 = vpop.f32.mrb[4].mxu0 }
 0x1b2   : > { %v661_v14 = vpop.f32.mrb[5].mxu0 }
 0x1b3   : > { %v3546_v15 = vpop.f32.mrb[6].mxu0 }
 0x1b4   : > { %v664_v16 = vpop.f32.mrb[7].mxu0  ;;  %v4634_v17 = vpack.c.bf16 %v3546_v15, %v3545_v13 }
 0x1b5   : > { %v4636_v18 = vpack.c.bf16 %v664_v16, %v661_v14 }
 0x1b7   : > { %3560 = vmatpush3.bf16.msra.mxu1 %v4636_v18 }
 0x1b8   : > { %3565 = vmatprep.subr.bf16.mxu1 %v4308_v22 }
 0x271   : > { %v723_v45 = vpop.f32.mrb[4].mxu1 }
 0x272   : > { %v3551_v46 = vpop.f32.mrb[5].mxu1  ;;  %v778_v47 = vsel %vm777_vm2, %v723_v45, -inf }
 0x273   : > { %779 = vmax.xlane.f32.xlu0 %v778_v47  ;;  %v726_v48 = vpop.f32.mrb[6].mxu1 }
 0x274   : > { %v3552_v49 = vpop.f32.mrb[7].mxu1  ;;  %v781_v50 = vsel %vm777_vm2, %v726_v48, -inf }
 0x277   : > { %782 = vmax.xlane.f32.xlu0 %v781_v50 }
 0x279   : > { %v770_v51 = vpop.f32.mrb[8].mxu1 }
 0x27a   : > { %v3557_v52 = vpop.f32.mrb[9].mxu1  ;;  %v784_v53 = vsel %vm777_vm2, %v770_v51, -inf }
 0x27b   : > { %785 = vmax.xlane.f32.xlu1 %v784_v53  ;;  %v773_v54 = vpop.f32.mrb[10].mxu1 }
 0x27c   : > { %v3558_v55 = vpop.f32.mrb[11].mxu1  ;;  %v787_v56 = vsel %vm777_vm2, %v773_v54, -inf }
 0x27f   : > { %788 = vmax.xlane.f32.xlu1 %v787_v56 }
 0x300   : > { %v780_v57 = vpop.xlane.xlu0 %779 }
 0x301   : > { %v790_v58 = vsub.f32 %v723_v45, %v780_v57 }
 0x303   : > { %v794_v59 = vmul.f32 1.442695, %v790_v58 }
 0x304   : > { %v783_v60 = vpop.xlane.xlu0 %782 }
 0x305   : > { %3951 = vpow2.f32 %v794_v59  ;;  %v791_v61 = vsub.f32 %v726_v48, %v783_v60 }
 0x307   : > { %v796_v62 = vmul.f32 1.442695, %v791_v61 }
 0x308   : > { %v786_v63 = vpop.xlane.xlu1 %785 }
 0x309   : > { %3953 = vpow2.f32 %v796_v62  ;;  %v792_v0 = vsub.f32 %v770_v51, %v786_v63 }
 0x30b   : > { %v798_v1 = vmul.f32 1.442695, %v792_v0 }
 0x30c   : > { %v789_v2 = vpop.xlane.xlu1 %788 }
 0x30d   : > { %3955 = vpow2.f32 %v798_v1  ;;  %v793_v3 = vsub.f32 %v773_v54, %v789_v2 }
 0x30f   : > { %v3952_v4 = vpop.eup %3951  ;;  %v800_v5 = vmul.f32 1.442695, %v793_v3 }
 0x310   : > { %v802_v6 = vsel %vm777_vm2, %v3952_v4, 0.0 }
 0x311   : > { %3957 = vpow2.f32 %v800_v5  ;;  %803 = vadd.xlane.f32.xlu0 %v802_v6 }
 0x313   : > { %v3954_v7 = vpop.eup %3953 }
 0x314   : > { %v805_v8 = vsel %vm777_vm2, %v3954_v7, 0.0 }
 0x315   : > { %806 = vadd.xlane.f32.xlu1 %v805_v8 }
 0x317   : > { %v3956_v9 = vpop.eup %3955 }
 0x318   : > { %v808_v10 = vsel %vm777_vm2, %v3956_v9, 0.0 }
 0x319   : > { %809 = vadd.xlane.f32.xlu0 %v808_v10 }
 0x31b   : > { %v3958_v11 = vpop.eup %3957 }
 0x31c   : > { %v811_v12 = vsel %vm777_vm2, %v3958_v11, 0.0 }
 0x31d   : > { %812 = vadd.xlane.f32.xlu1 %v811_v12 }
 0x32e   : > { %916 = vrot.lane.b32.xlu1 %v4609_v35, %s4310_s27 }
 0x32f   : > { %919 = vrot.lane.b32.xlu0 %v4603_v30, %s4310_s27 }
 0x332   : > { %972 = vrot.lane.b32.xlu1 %v4601_v27, %s4310_s27 }
 0x336   : > { %969 = vrot.lane.b32.xlu1 %v4605_v32, %s4310_s27 }
 0x39e   : > { %v804_v19 = vpop.xlane.xlu0 %803 }
 0x39f   : > { %3959 = vrcp.f32 %v804_v19 }
 0x3a2   : > { %v807_v20 = vpop.xlane.xlu1 %806 }
 0x3a3   : > { %3961 = vrcp.f32 %v807_v20 }
 0x3a6   : > { %v810_v21 = vpop.xlane.xlu0 %809 }
 0x3a7   : > { %3963 = vrcp.f32 %v810_v21 }
 0x3a9   : > { %v3960_v24 = vpop.eup %3959 }
 0x3aa   : > { %v813_v23 = vpop.xlane.xlu1 %812  ;;  %v818_v26 = vmul.f32 %v3960_v24, %v3952_v4  ;;  %v920_v37 = vpop.permute.xlu0 %919 }
 0x3ab   : > { %3965 = vrcp.f32 %v813_v23  ;;  %v925_v40 = vsel %vm682_vm1, %v920_v37, 0 }
 0x3ad   : > { %v3962_v25 = vpop.eup %3961 }
 0x3ae   : > { %v819_v28 = vmul.f32 %v3962_v25, %v3954_v7  ;;  %v917_v39 = vpop.permute.xlu1 %916 }
 0x3b0   : > { %v822_v29 = vpack.c.bf16 %v819_v28, %v818_v26 }
 0x3b1   : > { %v3964_v31 = vpop.eup %3963 }
 0x3b2   : > { %3562 = vmatmul.mubr.msk.bf16.vlgmr.msra.gmra.mrb[12].mxu1 %vm777_vm2, %v822_v29  ;;  %v820_v34 = vmul.f32 %v3964_v31, %v3956_v9  ;;  %v973_v41 = vpop.permute.xlu1 %972 }
 0x3b3   : > { %3566 = vmatpush3.bf16.msra.mxu1 %v4634_v17  ;;  %3567 = vmatprep.mubr.msk.bf16.mxu1 %vm4309_vm0, %v4308_v22  ;;  %v978_v42 = vsel %vm682_vm1, %v973_v41, 0 }
 0x3b4   : > { %3571 = vmatprep.subr.bf16.mxu1 %v4308_v22 }
 0x3b5   : > { %v3966_v33 = vpop.eup %3965 }
 0x3b6   : > { %v821_v36 = vmul.f32 %v3966_v33, %v3958_v11  ;;  %v970_v43 = vpop.permute.xlu1 %969 }
 0x3b8   : > { %v823_v38 = vpack.c.bf16 %v821_v36, %v820_v34 }
 0x3ba   : > { %3568 = vmatmul.mubr.msk.bf16.vlgmr.msra.gmra.mrb[16].mxu1 %vm777_vm2, %v823_v38 }
 0x3bb   : > { %3573 = vmatprep.mubr.msk.bf16.mxu1 %vm4309_vm0, %v4308_v22 }
 0x3bc   : > { %3572 = vmatpush3.bf16.xpose.msra.mxu1 %v925_v40 }
 0x3bd   : > { %3577 = vmatprep.subr.bf16.mxu1 %v4308_v22 }
 0x3c3   : > { %3574 = vmatmul.mubr.msk.bf16.vlgmr.msra.gmra.mrb[20].mxu1 %vm682_vm1, %v917_v39 }
 0x3c4   : > { %3578 = vmatpush3.bf16.xpose.msra.mxu1 %v978_v42  ;;  %3579 = vmatprep.mubr.msk.bf16.mxu1 %vm4309_vm0, %v4308_v22 }
 0x3c5   : > { %3589 = vmatprep.subr.bf16.mxu1 %v4308_v22 }
 0x3cb   : > { %3580 = vmatmul.mubr.msk.bf16.vlgmr.msra.gmra.mrb[24].mxu1 %vm682_vm1, %v970_v43 }
 0x3cc   : > { %3591 = vmatprep.mubr.msk.bf16.mxu1 %vm4309_vm0, %v4308_v22 }
 0x485   : > { %v4666_v44 = vpop.f32.mrb[12].mxu1 }
 0x486   : > { %v3563_v45 = vpop.f32.mrb[13].mxu1 }
 0x487   : > { %v4668_v46 = vpop.f32.mrb[14].mxu1 }
 0x488   : > { %v912_v47 = vpack.c.bf16 %v4668_v46, %v4666_v44  ;;  %v3564_v48 = vpop.f32.mrb[15].mxu1 }
 0x48d   : > { %v4672_v49 = vpop.f32.mrb[16].mxu1 }
 0x48e   : > { %v3569_v50 = vpop.f32.mrb[17].mxu1 }
 0x48f   : > { %v4674_v51 = vpop.f32.mrb[18].mxu1 }
 0x490   : > { %v913_v52 = vpack.c.bf16 %v4674_v51, %v4672_v49  ;;  %v3570_v53 = vpop.f32.mrb[19].mxu1 }
 0x496   : > { %v961_v54 = vpop.f32.mrb[20].mxu1 }
 0x497   : > { %v3575_v55 = vpop.f32.mrb[21].mxu1  ;;  %v1021_v0 = vsel %vm777_vm2, %v961_v54, -inf }
 0x498   : > { %v4678_v56 = vpop.f32.mrb[22].mxu1 }
 0x499   : > { %v3576_v57 = vpop.f32.mrb[23].mxu1  ;;  %v1024_v20 = vsel %vm777_vm2, %v4678_v56, -inf }
 0x49e   : > { %v1014_v58 = vpop.f32.mrb[24].mxu1 }
 0x49f   : > { %v3581_v59 = vpop.f32.mrb[25].mxu1  ;;  %v1027_v60 = vsel %vm777_vm2, %v1014_v58, -inf }
 0x4a0   : > { %1028 = vmax.xlane.f32.xlu0 %v1027_v60  ;;  %v1017_v61 = vpop.f32.mrb[26].mxu1 }
 0x4a1   : > { %v3582_v62 = vpop.f32.mrb[27].mxu1  ;;  %v1030_v63 = vsel %vm777_vm2, %v1017_v61, -inf }
 0x4a2   : > { %1031 = vmax.xlane.f32.xlu1 %v1030_v63 }
 0x4b3   : > { %1286 = vrot.lane.b32.xlu1 %v4603_v30, %s4311_s29 }
 0x4b7   : > { %1284 = vrot.lane.b32.xlu1 %v4609_v35, %s4311_s29 }
 0x4bb   : > { %1337 = vrot.lane.b32.xlu1 %v4601_v27, %s4311_s29 }
 0x4df   : > { %1022 = vmax.xlane.f32.xlu1 %v1021_v0 }
 0x4f0   : > { %1068 = vrot.lane.b32.xlu1 %v4636_v18, %s4310_s27 }
 0x52d   : > { %v1029_v1 = vpop.xlane.xlu0 %1028 }
 0x52e   : > { %v1035_v2 = vsub.f32 %v1014_v58, %v1029_v1 }
 0x52f   : > { %v1032_v3 = vpop.xlane.xlu1 %1031 }
 0x530   : > { %v1041_v4 = vmul.f32 1.442695, %v1035_v2  ;;  %v1036_v5 = vsub.f32 %v1017_v61, %v1032_v3 }
 0x532   : > { %3967 = vpow2.f32 %v1041_v4  ;;  %v1043_v6 = vmul.f32 1.442695, %v1036_v5 }
 0x533   : > { %v1287_v11 = vpop.permute.xlu1 %1286 }
 0x534   : > { %3969 = vpow2.f32 %v1043_v6  ;;  %v1292_v36 = vsel %vm682_vm1, %v1287_v11, 0 }
 0x537   : > { %v1285_v12 = vpop.permute.xlu1 %1284 }
 0x53b   : > { %v1338_v13 = vpop.permute.xlu1 %1337 }
 0x53c   : > { %v3968_v7 = vpop.eup %3967  ;;  %v1343_v37 = vsel %vm682_vm1, %v1338_v13, 0 }
 0x53d   : > { %v1051_v8 = vsel %vm777_vm2, %v3968_v7, 0.0 }
 0x53e   : > { %v3970_v9 = vpop.eup %3969  ;;  %1052 = vadd.xlane.f32.xlu0 %v1051_v8 }
 0x53f   : > { %v1054_v10 = vsel %vm777_vm2, %v3970_v9, 0.0 }
 0x542   : > { %1055 = vadd.xlane.f32.xlu0 %v1054_v10  ;;  %v1166_v10 = vld [vmem:[#allocation10 + $0x2] sm:$0x3] }
 0x543   : > { %v1175_v11 = vsel %vm1173_vm3, %v1166_v10, 0 }
 0x558   : > { %1116 = vrot.lane.b32.xlu0 %v4634_v17, %s4310_s27 }
 0x55c   : > { %1335 = vrot.lane.b32.xlu0 %v4605_v32, %s4311_s29 }
 0x56c   : > { %v1023_v14 = vpop.xlane.xlu1 %1022 }
 0x56d   : > { %v1033_v15 = vsub.f32 %v961_v54, %v1023_v14 }
 0x56f   : > { %v1037_v16 = vmul.f32 1.442695, %v1033_v15 }
 0x570   : > { %v1069_v19 = vpop.permute.xlu1 %1068 }
 0x571   : > { %3971 = vpow2.f32 %v1037_v16  ;;  %3584 = vmatpush3.bf16.msra.mxu0 %v1069_v19 }
 0x572   : > { %3815 = vmatprep.subr.msk.bf16.mxu0 %vm1173_vm3, %v1166_v10 }
 0x57b   : > { %v3972_v21 = vpop.eup %3971  ;;  %1025 = vmax.xlane.f32.xlu0 %v1024_v20 }
 0x57c   : > { %v1045_v23 = vsel %vm777_vm2, %v3972_v21, 0.0 }
 0x57f   : > { %1046 = vadd.xlane.f32.xlu0 %v1045_v23 }
 0x5cb   : > { %v1053_v24 = vpop.xlane.xlu0 %1052 }
 0x5cc   : > { %3973 = vrcp.f32 %v1053_v24 }
 0x5cf   : > { %v1056_v25 = vpop.xlane.xlu0 %1055 }
 0x5d0   : > { %3975 = vrcp.f32 %v1056_v25 }
 0x5d3   : > { %v1117_v26 = vpop.permute.xlu0 %1116 }
 0x5d4   : > { %3590 = vmatpush3.bf16.msra.mxu1 %v1117_v26 }
 0x5d5   : > { %3607 = vmatprep.subr.bf16.mxu1 %v4308_v22 }
 0x5d6   : > { %v3974_v28 = vpop.eup %3973 }
 0x5d7   : > { %v1063_v31 = vmul.f32 %v3974_v28, %v3968_v7  ;;  %v1336_v38 = vpop.permute.xlu0 %1335 }
 0x5da   : > { %v3976_v29 = vpop.eup %3975 }
 0x5db   : > { %v1064_v33 = vmul.f32 %v3976_v29, %v3970_v9 }
 0x5dd   : > { %v1066_v34 = vpack.c.bf16 %v1064_v33, %v1063_v31 }
 0x5df   : > { %3592 = vmatmul.mubr.msk.bf16.vlgmr.msra.gmra.mrb[28].mxu1 %vm777_vm2, %v1066_v34 }
 0x5e0   : > { %3608 = vmatpush3.bf16.xpose.msra.mxu1 %v1292_v36  ;;  %3609 = vmatprep.mubr.msk.bf16.mxu1 %vm4309_vm0, %v4308_v22 }
 0x5e1   : > { %3613 = vmatprep.subr.bf16.mxu1 %v4308_v22 }
 0x5e7   : > { %3610 = vmatmul.mubr.msk.bf16.vlgmr.msra.gmra.mrb[32].mxu1 %vm682_vm1, %v1285_v12  ;;  %v914_v12 = vld [vmem:[#allocation10] sm:$0x3] }
 0x5e8   : > { %3614 = vmatpush3.bf16.xpose.msra.mxu1 %v1343_v37  ;;  %3615 = vmatprep.mubr.msk.bf16.mxu1 %vm4309_vm0, %v4308_v22 }
 0x5e9   : > { %3625 = vmatprep.subr.bf16.mxu1 %v4308_v22 }
 0x5ef   : > { %3616 = vmatmul.mubr.msk.bf16.vlgmr.msra.gmra.mrb[36].mxu1 %vm682_vm1, %v1336_v38 }
 0x5f0   : > { %3627 = vmatprep.mubr.msk.bf16.mxu1 %vm4309_vm0, %v4308_v22 }
 0x608   : > { %v1026_v39 = vpop.xlane.xlu0 %1025 }
 0x609   : > { %v1034_v40 = vsub.f32 %v4678_v56, %v1026_v39 }
 0x60b   : > { %v1039_v41 = vmul.f32 1.442695, %v1034_v40 }
 0x60c   : > { %v1047_v45 = vpop.xlane.xlu0 %1046 }
 0x60d   : > { %3977 = vpow2.f32 %v1039_v41 }
 0x60e   : > { %3979 = vrcp.f32 %v1047_v45 }
 0x617   : > { %v3978_v42 = vpop.eup %3977 }
 0x618   : > { %v1048_v43 = vsel %vm777_vm2, %v3978_v42, 0.0  ;;  %v3980_v50 = vpop.eup %3979 }
 0x619   : > { %1049 = vadd.xlane.f32.xlu0 %v1048_v43  ;;  %v1061_v54 = vmul.f32 %v3980_v50, %v3972_v21 }
 0x6a6   : > { %v1050_v48 = vpop.xlane.xlu0 %1049 }
 0x6a7   : > { %3981 = vrcp.f32 %v1050_v48  ;;  %v1233_v48 = vsel %vm1173_vm3, %v914_v12, 0 }
 0x6b1   : > { %v3982_v53 = vpop.eup %3981 }
 0x6b2   : > { %v1062_v55 = vmul.f32 %v3982_v53, %v3978_v42  ;;  %v4716_v57 = vpop.f32.mrb[28].mxu1 }
 0x6b3   : > { %v3593_v58 = vpop.f32.mrb[29].mxu1 }
 0x6b4   : > { %v4718_v59 = vpop.f32.mrb[30].mxu1  ;;  %v1065_v56 = vpack.c.bf16 %v1062_v55, %v1061_v54 }
 0x6b5   : > { %v1164_v60 = vpack.c.bf16 %v4718_v59, %v4716_v57  ;;  %v3594_v61 = vpop.f32.mrb[31].mxu1 }
 0x6b6   : > { %3586 = vmatmul.mubr.msk.bf16.vlgmr.msra.gmra.mrb[8].mxu0 %vm777_vm2, %v1065_v56 }
 0x6b7   : > { %3596 = vmatpush3.bf16.msra.mxu0 %v1175_v11 }
 0x6b8   : > { %3816 = vmatprep.subr.msk.bf16.mxu0 %vm1173_vm3, %v914_v12 }
 0x6ba   : > { %v1328_v62 = vpop.f32.mrb[32].mxu1 }
 0x6bb   : > { %v3611_v63 = vpop.f32.mrb[33].mxu1  ;;  %v1386_v0 = vsel %vm777_vm2, %v1328_v62, -inf }
 0x6bc   : > { %1387 = vmax.xlane.f32.xlu0 %v1386_v0  ;;  %v1331_v1 = vpop.f32.mrb[34].mxu1 }
 0x6bd   : > { %v3612_v2 = vpop.f32.mrb[35].mxu1  ;;  %v1389_v3 = vsel %vm777_vm2, %v1331_v1, -inf }
 0x6c0   : > { %1390 = vmax.xlane.f32.xlu0 %v1389_v3 }
 0x6c2   : > { %v1379_v4 = vpop.f32.mrb[36].mxu1 }
 0x6c3   : > { %v3617_v5 = vpop.f32.mrb[37].mxu1  ;;  %v1392_v6 = vsel %vm777_vm2, %v1379_v4, -inf }
 0x6c4   : > { %1393 = vmax.xlane.f32.xlu0 %v1392_v6  ;;  %v1382_v7 = vpop.f32.mrb[38].mxu1 }
 0x6c5   : > { %v3618_v8 = vpop.f32.mrb[39].mxu1  ;;  %v1395_v9 = vsel %vm777_vm2, %v1382_v7, -inf }
 0x6c8   : > { %1396 = vmax.xlane.f32.xlu0 %v1395_v9 }
 0x749   : > { %v1388_v13 = vpop.xlane.xlu0 %1387 }
 0x74a   : > { %v1398_v14 = vsub.f32 %v1328_v62, %v1388_v13 }
 0x74c   : > { %v1402_v15 = vmul.f32 1.442695, %v1398_v14 }
 0x74d   : > { %v1391_v16 = vpop.xlane.xlu0 %1390 }
 0x74e   : > { %3983 = vpow2.f32 %v1402_v15  ;;  %v1399_v19 = vsub.f32 %v1331_v1, %v1391_v16  ;;  %v1529_v1 = vld [vmem:[#allocation10 + $0x4] sm:$0x3] }
 0x74f   : > { %v1537_v2 = vsel %vm1173_vm3, %v1529_v1, 0 }
 0x750   : > { %v1404_v20 = vmul.f32 1.442695, %v1399_v19 }
 0x751   : > { %v1394_v21 = vpop.xlane.xlu0 %1393 }
 0x752   : > { %3985 = vpow2.f32 %v1404_v20  ;;  %v1400_v23 = vsub.f32 %v1379_v4, %v1394_v21 }
 0x754   : > { %v1406_v24 = vmul.f32 1.442695, %v1400_v23 }
 0x755   : > { %v1397_v25 = vpop.xlane.xlu0 %1396 }
 0x756   : > { %3987 = vpow2.f32 %v1406_v24  ;;  %v1401_v26 = vsub.f32 %v1382_v7, %v1397_v25 }
 0x758   : > { %v3984_v28 = vpop.eup %3983  ;;  %v1408_v29 = vmul.f32 1.442695, %v1401_v26 }
 0x759   : > { %v1410_v31 = vsel %vm777_vm2, %v3984_v28, 0.0 }
 0x75a   : > { %3989 = vpow2.f32 %v1408_v29  ;;  %1411 = vadd.xlane.f32.xlu1 %v1410_v31 }
 0x75c   : > { %v3986_v33 = vpop.eup %3985 }
 0x75d   : > { %v1413_v34 = vsel %vm777_vm2, %v3986_v33, 0.0 }
 0x75e   : > { %1414 = vadd.xlane.f32.xlu0 %v1413_v34 }
 0x760   : > { %v3988_v36 = vpop.eup %3987 }
 0x761   : > { %v1416_v37 = vsel %vm777_vm2, %v3988_v36, 0.0 }
 0x762   : > { %1417 = vadd.xlane.f32.xlu0 %v1416_v37 }
 0x764   : > { %v3990_v38 = vpop.eup %3989 }
 0x765   : > { %v1419_v39 = vsel %vm777_vm2, %v3990_v38, 0.0 }
 0x766   : > { %1420 = vadd.xlane.f32.xlu0 %v1419_v39 }
 0x76b   : > { %1479 = vrot.lane.b32.xlu1 %v4634_v17, %s4311_s29 }
 0x77c   : > { %1432 = vrot.lane.b32.xlu0 %v4636_v18, %s4311_s29  ;;  %s4221_s29 = scalar_lea.vmem %s4977_s15, 512 }
 0x77d   : > { %p4222_p0 = scmp.ne.s32.totalorder %s4977_s15, %s4221_s29 }
 0x77f   : > { %p4223_p5 = pnand %p4222_p0, %p4525_p3 }
 0x780   : > { %1594 = vrot.lane.b32.xlu0 %v4603_v30, %s4312_s7 }
 0x781   : > { %p4224_p7 = pneg %p4223_p5 }
 0x784   : > { %1592 = vrot.lane.b32.xlu0 %v4609_v35, %s4312_s7 }
 0x788   : > { %1645 = vrot.lane.b32.xlu0 %v4601_v27, %s4312_s7 }
 0x789   : > { %v1108_v40 = vpop.f32.mrb[8].mxu0 }
 0x78a   : > { %v3587_v41 = vpop.f32.mrb[9].mxu0 }
 0x78b   : > { %v1111_v42 = vpop.f32.mrb[10].mxu0 }
 0x78c   : > { %v1163_v43 = vpack.c.bf16 %v1111_v42, %v1108_v40  ;;  %v3588_v45 = vpop.f32.mrb[11].mxu0  ;;  %1643 = vrot.lane.b32.xlu0 %v4605_v32, %s4312_s7 }
 0x78e   : > { %3597 = vmatprep.mubr.msk.bf16.mxu0 %vm682_vm1, %v1163_v43 }
 0x78f   : > { %3598 = vmatmul.mubr.msk.bf16.vlgmr.msra.gmra.mrb[12].mxu0 %vm682_vm1, %v1164_v60 }
 0x790   : > { %3603 = vmatprep.mubr.msk.bf16.mxu0 %vm682_vm1, %v912_v47  ;;  %3602 = vmatpush3.bf16.msra.mxu0 %v1233_v48 }
 0x791   : > { %3619 = vmatprep.subr.bf16.mxu0 %v4308_v22 }
 0x79b   : > { %3604 = vmatmul.mubr.msk.bf16.vlgmr.msra.gmra.mrb[12].mxu0 %vm682_vm1, %v913_v52 }
 0x79c   : > { %3621 = vmatprep.mubr.msk.bf16.mxu0 %vm4309_vm0, %v4308_v22 }
 0x7e7   : > { %v1412_v50 = vpop.xlane.xlu1 %1411 }
 0x7e8   : > { %3991 = vrcp.f32 %v1412_v50 }
 0x7eb   : > { %v1480_v53 = vpop.permute.xlu1 %1479  ;;  %v1415_v54 = vpop.xlane.xlu0 %1414 }
 0x7ec   : > { %3993 = vrcp.f32 %v1415_v54  ;;  %3626 = vmatpush3.bf16.msra.mxu1 %v1480_v53 }
 0x7ed   : > { %3637 = vmatprep.subr.bf16.mxu1 %v4308_v22 }
 0x7ef   : > { %v1418_v44 = vpop.xlane.xlu0 %1417 }
 0x7f0   : > { %3995 = vrcp.f32 %v1418_v44 }
 0x7f2   : > { %v3992_v47 = vpop.eup %3991 }
 0x7f3   : > { %v1421_v46 = vpop.xlane.xlu0 %1420  ;;  %v1426_v49 = vmul.f32 %v3992_v47, %v3984_v28 }
 0x7f4   : > { %3997 = vrcp.f32 %v1421_v46 }
 0x7f6   : > { %v3994_v55 = vpop.eup %3993 }
 0x7f7   : > { %v1427_v51 = vmul.f32 %v3994_v55, %v3986_v33  ;;  %v1433_v52 = vpop.permute.xlu0 %1432 }
 0x7f8   : > { %3620 = vmatpush3.bf16.msra.mxu0 %v1433_v52 }
 0x7f9   : > { %v1430_v57 = vpack.c.bf16 %v1427_v51, %v1426_v49  ;;  %3817 = vmatprep.subr.msk.bf16.mxu0 %vm1173_vm3, %v1529_v1 }
 0x7fa   : > { %v3996_v58 = vpop.eup %3995 }
 0x7fb   : > { %3622 = vmatmul.mubr.msk.bf16.vlgmr.msra.gmra.mrb[16].mxu0 %vm777_vm2, %v1430_v57  ;;  %v1428_v56 = vmul.f32 %v3996_v58, %v3988_v36  ;;  %v1595_v61 = vpop.permute.xlu0 %1594 }
 0x7fc   : > { %v1600_v63 = vsel %vm682_vm1, %v1595_v61, 0  ;;  %3632 = vmatpush3.bf16.msra.mxu0 %v1537_v2 }
 0x7fd   : > { %3643 = vmatprep.subr.bf16.mxu0 %v4308_v22 }
 0x7fe   : > { %v3998_v59 = vpop.eup %3997 }
 0x7ff   : > { %v1429_v60 = vmul.f32 %v3998_v59, %v3990_v38  ;;  %v1593_v0 = vpop.permute.xlu0 %1592 }
 0x801   : > { %v1431_v62 = vpack.c.bf16 %v1429_v60, %v1428_v56 }
 0x803   : > { %3628 = vmatmul.mubr.msk.bf16.vlgmr.msra.gmra.mrb[40].mxu1 %vm777_vm2, %v1431_v62  ;;  %v1646_v10 = vpop.permute.xlu0 %1645 }
 0x804   : > { %3638 = vmatpush3.bf16.xpose.msra.mxu1 %v1600_v63  ;;  %3639 = vmatprep.mubr.msk.bf16.mxu1 %vm4309_vm0, %v4308_v22  ;;  %v1651_v14 = vsel %vm682_vm1, %v1646_v10, 0 }
 0x805   : > { %3649 = vmatprep.subr.bf16.mxu1 %v4308_v22 }
 0x807   : > { %v1644_v24 = vpop.permute.xlu0 %1643 }
 0x80b   : > { %3640 = vmatmul.mubr.msk.bf16.vlgmr.msra.gmra.mrb[44].mxu1 %vm682_vm1, %v1593_v0 }
 0x80c   : > { %3651 = vmatprep.mubr.msk.bf16.mxu1 %vm4309_vm0, %v4308_v22 }
 0x8ce   : > { %v1472_v3 = vpop.f32.mrb[16].mxu0 }
 0x8cf   : > { %v3623_v4 = vpop.f32.mrb[17].mxu0 }
 0x8d0   : > { %v1475_v5 = vpop.f32.mrb[18].mxu0 }
 0x8d1   : > { %v1526_v6 = vpack.c.bf16 %v1475_v5, %v1472_v3  ;;  %v3624_v7 = vpop.f32.mrb[19].mxu0 }
 0x8d3   : > { %3633 = vmatprep.mubr.msk.bf16.mxu0 %vm682_vm1, %v1526_v6 }
 0x8d6   : > { %v1519_v8 = vpop.f32.mrb[40].mxu1 }
 0x8d7   : > { %v3629_v9 = vpop.f32.mrb[41].mxu1 }
 0x8d8   : > { %v1522_v11 = vpop.f32.mrb[42].mxu1 }
 0x8d9   : > { %v1527_v12 = vpack.c.bf16 %v1522_v11, %v1519_v8  ;;  %v3630_v13 = vpop.f32.mrb[43].mxu1 }
 0x8db   : > { %3634 = vmatmul.mubr.msk.bf16.vlgmr.msra.gmra.mrb[12].mxu0 %vm682_vm1, %v1527_v12 }
 0x8dc   : > { %3644 = vmatpush3.bf16.xpose.msra.mxu0 %v1651_v14  ;;  %3645 = vmatprep.mubr.msk.bf16.mxu0 %vm4309_vm0, %v4308_v22 }
 0x8dd   : > { %3655 = vmatprep.subr.bf16.mxu0 %v4308_v22 }
 0x8de   : > { %v1636_v15 = vpop.f32.mrb[44].mxu1 }
 0x8df   : > { %v3641_v16 = vpop.f32.mrb[45].mxu1  ;;  %v1694_v19 = vsel %vm777_vm2, %v1636_v15, -inf }
 0x8e0   : > { %1695 = vmax.xlane.f32.xlu0 %v1694_v19  ;;  %v1639_v20 = vpop.f32.mrb[46].mxu1 }
 0x8e1   : > { %v3642_v21 = vpop.f32.mrb[47].mxu1  ;;  %v1697_v23 = vsel %vm777_vm2, %v1639_v20, -inf }
 0x8e2   : > { %1698 = vmax.xlane.f32.xlu1 %v1697_v23 }
 0x8e3   : > { %3646 = vmatmul.mubr.msk.bf16.vlgmr.msra.gmra.mrb[20].mxu0 %vm682_vm1, %v1644_v24 }
 0x8e4   : > { %3657 = vmatprep.mubr.msk.bf16.mxu0 %vm4309_vm0, %v4308_v22 }
 0x8f3   : > { %1740 = vrot.lane.b32.xlu1 %v4636_v18, %s4312_s7 }
 0x8f7   : > { %1900 = vrot.lane.b32.xlu1 %v4609_v35, %s4313_s30 }
 0x8fb   : > { %1953 = vrot.lane.b32.xlu1 %v4601_v27, %s4313_s30 }
 0x96d   : > { %v1696_v25 = vpop.xlane.xlu0 %1695 }
 0x96e   : > { %v1706_v26 = vsub.f32 %v1636_v15, %v1696_v25 }
 0x96f   : > { %v1699_v28 = vpop.xlane.xlu1 %1698 }
 0x970   : > { %v1710_v29 = vmul.f32 1.442695, %v1706_v26  ;;  %v1707_v31 = vsub.f32 %v1639_v20, %v1699_v28 }
 0x972   : > { %3999 = vpow2.f32 %v1710_v29  ;;  %v1712_v33 = vmul.f32 1.442695, %v1707_v31 }
 0x973   : > { %v1741_v34 = vpop.permute.xlu1 %1740 }
 0x974   : > { %4001 = vpow2.f32 %v1712_v33  ;;  %3650 = vmatpush3.bf16.msra.mxu1 %v1741_v34 }
 0x975   : > { %3667 = vmatprep.subr.bf16.mxu1 %v4308_v22 }
 0x977   : > { %v1901_v51 = vpop.permute.xlu1 %1900 }
 0x97b   : > { %v1954_v57 = vpop.permute.xlu1 %1953 }
 0x97c   : > { %v4000_v36 = vpop.eup %3999  ;;  %v1959_v58 = vsel %vm682_vm1, %v1954_v57, 0 }
 0x97d   : > { %v1718_v37 = vsel %vm777_vm2, %v4000_v36, 0.0 }
 0x97e   : > { %v4002_v38 = vpop.eup %4001  ;;  %1719 = vadd.xlane.f32.xlu0 %v1718_v37  ;;  %v1837_v37 = vld [vmem:[#allocation10 + $0x6] sm:$0x3] }
 0x97f   : > { %v1721_v39 = vsel %vm777_vm2, %v4002_v38, 0.0 }
 0x982   : > { %1722 = vadd.xlane.f32.xlu0 %v1721_v39 }
 0x998   : > { %1902 = vrot.lane.b32.xlu0 %v4603_v30, %s4313_s30 }
 0x99c   : > { %1951 = vrot.lane.b32.xlu0 %v4605_v32, %s4313_s30 }
 0x9b6   : > { %v1687_v40 = vpop.f32.mrb[20].mxu0 }
 0x9b7   : > { %v3647_v41 = vpop.f32.mrb[21].mxu0  ;;  %v1700_v42 = vsel %vm777_vm2, %v1687_v40, -inf }
 0x9b8   : > { %v1690_v43 = vpop.f32.mrb[22].mxu0  ;;  %1701 = vmax.xlane.f32.xlu1 %v1700_v42 }
 0x9b9   : > { %v3648_v45 = vpop.f32.mrb[23].mxu0  ;;  %v1703_v48 = vsel %vm777_vm2, %v1690_v43, -inf }
 0x9bb   : > { %1704 = vmax.xlane.f32.xlu0 %v1703_v48 }
 0xa0b   : > { %v1720_v50 = vpop.xlane.xlu0 %1719 }
 0xa0c   : > { %4003 = vrcp.f32 %v1720_v50 }
 0xa0f   : > { %v1723_v53 = vpop.xlane.xlu0 %1722 }
 0xa10   : > { %4005 = vrcp.f32 %v1723_v53 }
 0xa13   : > { %v1903_v55 = vpop.permute.xlu0 %1902 }
 0xa14   : > { %v1908_v52 = vsel %vm682_vm1, %v1903_v55, 0 }
 0xa16   : > { %v4004_v54 = vpop.eup %4003 }
 0xa17   : > { %v1734_v46 = vmul.f32 %v4004_v54, %v4000_v36  ;;  %v1952_v59 = vpop.permute.xlu0 %1951 }
 0xa1a   : > { %v4006_v44 = vpop.eup %4005 }
 0xa1b   : > { %v1735_v47 = vmul.f32 %v4006_v44, %v4002_v38  ;;  %v1845_v38 = vsel %vm1173_vm3, %v1837_v37, 0 }
 0xa1d   : > { %v1738_v49 = vpack.c.bf16 %v1735_v47, %v1734_v46 }
 0xa1f   : > { %3652 = vmatmul.mubr.msk.bf16.vlgmr.msra.gmra.mrb[48].mxu1 %vm777_vm2, %v1738_v49 }
 0xa20   : > { %3668 = vmatpush3.bf16.xpose.msra.mxu1 %v1908_v52  ;;  %3669 = vmatprep.mubr.msk.bf16.mxu1 %vm4309_vm0, %v4308_v22 }
 0xa21   : > { %3673 = vmatprep.subr.bf16.mxu1 %v4308_v22 }
 0xa27   : > { %3670 = vmatmul.mubr.msk.bf16.vlgmr.msra.gmra.mrb[52].mxu1 %vm682_vm1, %v1901_v51 }
 0xa28   : > { %3674 = vmatpush3.bf16.xpose.msra.mxu1 %v1959_v58  ;;  %3675 = vmatprep.mubr.msk.bf16.mxu1 %vm4309_vm0, %v4308_v22 }
 0xa29   : > { %3685 = vmatprep.subr.bf16.mxu1 %v4308_v22 }
 0xa2f   : > { %3676 = vmatmul.mubr.msk.bf16.vlgmr.msra.gmra.mrb[56].mxu1 %vm682_vm1, %v1952_v59 }
 0xa30   : > { %3687 = vmatprep.mubr.msk.bf16.mxu1 %vm4309_vm0, %v4308_v22 }
 0xa45   : > { %v1702_v56 = vpop.xlane.xlu1 %1701 }
 0xa46   : > { %v1708_v60 = vsub.f32 %v1687_v40, %v1702_v56 }
 0xa48   : > { %v1714_v61 = vmul.f32 1.442695, %v1708_v60  ;;  %v1705_v62 = vpop.xlane.xlu0 %1704 }
 0xa49   : > { %v1709_v63 = vsub.f32 %v1690_v43, %v1705_v62 }
 0xa4a   : > { %4007 = vpow2.f32 %v1714_v61 }
 0xa4b   : > { %v1716_v0 = vmul.f32 1.442695, %v1709_v63 }
 0xa4d   : > { %4009 = vpow2.f32 %v1716_v0 }
 0xa54   : > { %v4008_v1 = vpop.eup %4007 }
 0xa55   : > { %v1724_v2 = vsel %vm777_vm2, %v4008_v1, 0.0 }
 0xa56   : > { %1725 = vadd.xlane.f32.xlu0 %v1724_v2 }
 0xa57   : > { %v4010_v3 = vpop.eup %4009 }
 0xa58   : > { %v1727_v4 = vsel %vm777_vm2, %v4010_v3, 0.0 }
 0xa59   : > { %1728 = vadd.xlane.f32.xlu1 %v1727_v4 }
 0xa6c   : > { %1787 = vrot.lane.b32.xlu0 %v4634_v17, %s4312_s7  ;;  %s4317_s7 = smov [#allocation11]  }
 0xae3   : > { %v1726_v5 = vpop.xlane.xlu0 %1725 }
 0xae4   : > { %4011 = vrcp.f32 %v1726_v5 }
 0xae6   : > { %v1729_v6 = vpop.xlane.xlu1 %1728 }
 0xae7   : > { %4013 = vrcp.f32 %v1729_v6  ;;  %v1788_v7 = vpop.permute.xlu0 %1787 }
 0xae8   : > { %3656 = vmatpush3.bf16.msra.mxu0 %v1788_v7 }
 0xae9   : > { %3818 = vmatprep.subr.msk.bf16.mxu0 %vm1173_vm3, %v1837_v37 }
 0xaee   : > { %v4012_v8 = vpop.eup %4011 }
 0xaef   : > { %v1736_v10 = vmul.f32 %v4012_v8, %v4008_v1 }
 0xaf1   : > { %v4014_v9 = vpop.eup %4013 }
 0xaf2   : > { %v1737_v11 = vmul.f32 %v4014_v9, %v4010_v3  ;;  %v1780_v12 = vpop.f32.mrb[48].mxu1 }
 0xaf3   : > { %v3653_v13 = vpop.f32.mrb[49].mxu1 }
 0xaf4   : > { %v1783_v14 = vpop.f32.mrb[50].mxu1  ;;  %v1739_v15 = vpack.c.bf16 %v1737_v11, %v1736_v10 }
 0xaf5   : > { %v1834_v16 = vpack.c.bf16 %v1783_v14, %v1780_v12  ;;  %v3654_v19 = vpop.f32.mrb[51].mxu1 }
 0xaf6   : > { %3658 = vmatmul.mubr.msk.bf16.vlgmr.msra.gmra.mrb[24].mxu0 %vm777_vm2, %v1739_v15 }
 0xaf7   : > { %3663 = vmatprep.mubr.msk.bf16.mxu0 %vm682_vm1, %v1834_v16  ;;  %3662 = vmatpush3.bf16.msra.mxu0 %v1845_v38 }
 0xaf8   : > { %3679 = vmatprep.subr.bf16.mxu0 %v4308_v22 }
 0xafa   : > { %v1944_v20 = vpop.f32.mrb[52].mxu1 }
 0xafb   : > { %v3671_v21 = vpop.f32.mrb[53].mxu1  ;;  %v2002_v23 = vsel %vm777_vm2, %v1944_v20, -inf }
 0xafc   : > { %2003 = vmax.xlane.f32.xlu1 %v2002_v23  ;;  %v1947_v24 = vpop.f32.mrb[54].mxu1  ;;  %v2145_v21 = vld [vmem:[#allocation10 + $0x8] sm:$0x3] }
 0xafd   : > { %v3672_v25 = vpop.f32.mrb[55].mxu1  ;;  %v2005_v26 = vsel %vm777_vm2, %v1947_v24, -inf  ;;  %v2153_v23 = vsel %vm1173_vm3, %v2145_v21, 0 }
 0xb00   : > { %2006 = vmax.xlane.f32.xlu1 %v2005_v26 }
 0xb02   : > { %v1995_v28 = vpop.f32.mrb[56].mxu1 }
 0xb03   : > { %v3677_v29 = vpop.f32.mrb[57].mxu1  ;;  %v2008_v31 = vsel %vm777_vm2, %v1995_v28, -inf }
 0xb04   : > { %2009 = vmax.xlane.f32.xlu1 %v2008_v31  ;;  %v1998_v33 = vpop.f32.mrb[58].mxu1 }
 0xb05   : > { %v3678_v34 = vpop.f32.mrb[59].mxu1  ;;  %v2011_v36 = vsel %vm777_vm2, %v1998_v33, -inf }
 0xb08   : > { %2012 = vmax.xlane.f32.xlu1 %v2011_v36 }
 0xb89   : > { %v2004_v39 = vpop.xlane.xlu1 %2003 }
 0xb8a   : > { %v2014_v40 = vsub.f32 %v1944_v20, %v2004_v39 }
 0xb8c   : > { %v2018_v41 = vmul.f32 1.442695, %v2014_v40 }
 0xb8d   : > { %v2007_v42 = vpop.xlane.xlu1 %2006 }
 0xb8e   : > { %4015 = vpow2.f32 %v2018_v41  ;;  %v2015_v43 = vsub.f32 %v1947_v24, %v2007_v42 }
 0xb90   : > { %v2020_v45 = vmul.f32 1.442695, %v2015_v43 }
 0xb91   : > { %v2010_v48 = vpop.xlane.xlu1 %2009 }
 0xb92   : > { %4017 = vpow2.f32 %v2020_v45  ;;  %v2016_v50 = vsub.f32 %v1995_v28, %v2010_v48 }
 0xb94   : > { %v2022_v53 = vmul.f32 1.442695, %v2016_v50 }
 0xb95   : > { %v2013_v51 = vpop.xlane.xlu1 %2012 }
 0xb96   : > { %4019 = vpow2.f32 %v2022_v53  ;;  %v2017_v52 = vsub.f32 %v1998_v33, %v2013_v51 }
 0xb98   : > { %v4016_v54 = vpop.eup %4015  ;;  %v2024_v57 = vmul.f32 1.442695, %v2017_v52 }
 0xb99   : > { %v2026_v44 = vsel %vm777_vm2, %v4016_v54, 0.0 }
 0xb9a   : > { %2027 = vadd.xlane.f32.xlu1 %v2026_v44  ;;  %4021 = vpow2.f32 %v2024_v57 }
 0xb9c   : > { %v4018_v46 = vpop.eup %4017 }
 0xb9d   : > { %v2029_v47 = vsel %vm777_vm2, %v4018_v46, 0.0 }
 0xb9e   : > { %2030 = vadd.xlane.f32.xlu1 %v2029_v47 }
 0xba0   : > { %v4020_v55 = vpop.eup %4019 }
 0xba1   : > { %v2032_v49 = vsel %vm777_vm2, %v4020_v55, 0.0 }
 0xba2   : > { %2033 = vadd.xlane.f32.xlu0 %v2032_v49 }
 0xba4   : > { %v4022_v62 = vpop.eup %4021 }
 0xba5   : > { %v2035_v63 = vsel %vm777_vm2, %v4022_v62, 0.0 }
 0xbaf   : > { %2048 = vrot.lane.b32.xlu1 %v4636_v18, %s4313_s30 }
 0xbb8   : > { %2208 = vrot.lane.b32.xlu0 %v4609_v35, %s4314_s18 }
 0xbc9   : > { %v1827_v58 = vpop.f32.mrb[24].mxu0 }
 0xbca   : > { %v3659_v59 = vpop.f32.mrb[25].mxu0 }
 0xbcb   : > { %v1830_v56 = vpop.f32.mrb[26].mxu0 }
 0xbcc   : > { %v1835_v60 = vpack.c.bf16 %v1830_v56, %v1827_v58  ;;  %v3660_v61 = vpop.f32.mrb[27].mxu0 }
 0xbce   : > { %3664 = vmatmul.mubr.msk.bf16.vlgmr.msra.gmra.mrb[12].mxu0 %vm682_vm1, %v1835_v60 }
 0xbcf   : > { %3681 = vmatprep.mubr.msk.bf16.mxu0 %vm4309_vm0, %v4308_v22 }
 0xbd3   : > { %2036 = vadd.xlane.f32.xlu1 %v2035_v63 }
 0xbe4   : > { %2095 = vrot.lane.b32.xlu1 %v4634_v17, %s4313_s30  ;;  %s4225_s30 = sshll.u32 %s4317_s7, 4  ;;  %s4226_s30 = int_to_ptr.vmem [resolvable:$false] %s4225_s30 }
 0xbe5   : > { %p4228_p11 = scmp.lt.s32.totalorder %s4977_s15, %s4226_s30 }
 0xbe8   : > { %2210 = vrot.lane.b32.xlu1 %v4603_v30, %s4314_s18 }
 0xbec   : > { %2261 = vrot.lane.b32.xlu1 %v4601_v27, %s4314_s18 }
 0xbf0   : > { %2259 = vrot.lane.b32.xlu1 %v4605_v32, %s4314_s18 }
 0xc27   : > { %v2028_v0 = vpop.xlane.xlu1 %2027 }
 0xc28   : > { %4023 = vrcp.f32 %v2028_v0 }
 0xc2b   : > { %v2031_v1 = vpop.xlane.xlu1 %2030 }
 0xc2c   : > { %4025 = vrcp.f32 %v2031_v1 }
 0xc2f   : > { %v2049_v2 = vpop.permute.xlu1 %2048  ;;  %v2034_v8 = vpop.xlane.xlu0 %2033 }
 0xc30   : > { %3680 = vmatpush3.bf16.msra.mxu0 %v2049_v2  ;;  %4027 = vrcp.f32 %v2034_v8 }
 0xc31   : > { %3819 = vmatprep.subr.msk.bf16.mxu0 %vm1173_vm3, %v2145_v21 }
 0xc32   : > { %v4024_v3 = vpop.eup %4023 }
 0xc33   : > { %v2042_v5 = vmul.f32 %v4024_v3, %v4016_v54  ;;  %v2209_v20 = vpop.permute.xlu0 %2208 }
 0xc36   : > { %v4026_v4 = vpop.eup %4025 }
 0xc37   : > { %v2043_v6 = vmul.f32 %v4026_v4, %v4018_v46 }
 0xc39   : > { %v2046_v7 = vpack.c.bf16 %v2043_v6, %v2042_v5 }
 0xc3a   : > { %v4028_v11 = vpop.eup %4027 }
 0xc3b   : > { %3682 = vmatmul.mubr.msk.bf16.vlgmr.msra.gmra.mrb[28].mxu0 %vm777_vm2, %v2046_v7  ;;  %v2044_v13 = vmul.f32 %v4028_v11, %v4020_v55 }
 0xc3c   : > { %3692 = vmatpush3.bf16.msra.mxu0 %v2153_v23 }
 0xc3d   : > { %3703 = vmatprep.subr.bf16.mxu0 %v4308_v22 }
 0xc60   : > { %v2037_v9 = vpop.xlane.xlu1 %2036 }
 0xc61   : > { %4029 = vrcp.f32 %v2037_v9 }
 0xc64   : > { %v2096_v10 = vpop.permute.xlu1 %2095 }
 0xc65   : > { %3686 = vmatpush3.bf16.msra.mxu1 %v2096_v10 }
 0xc66   : > { %3697 = vmatprep.subr.bf16.mxu1 %v4308_v22 }
 0xc68   : > { %v2211_v15 = vpop.permute.xlu1 %2210 }
 0xc69   : > { %v2216_v19 = vsel %vm682_vm1, %v2211_v15, 0 }
 0xc6b   : > { %v4030_v12 = vpop.eup %4029 }
 0xc6c   : > { %v2045_v14 = vmul.f32 %v4030_v12, %v4022_v62  ;;  %v2262_v34 = vpop.permute.xlu1 %2261 }
 0xc6d   : > { %v2267_v39 = vsel %vm682_vm1, %v2262_v34, 0 }
 0xc6e   : > { %v2047_v16 = vpack.c.bf16 %v2045_v14, %v2044_v13 }
 0xc70   : > { %3688 = vmatmul.mubr.msk.bf16.vlgmr.msra.gmra.mrb[60].mxu1 %vm777_vm2, %v2047_v16  ;;  %v2260_v50 = vpop.permute.xlu1 %2259 }
 0xc71   : > { %3698 = vmatpush3.bf16.xpose.msra.mxu1 %v2216_v19  ;;  %3699 = vmatprep.mubr.msk.bf16.mxu1 %vm4309_vm0, %v4308_v22 }
 0xc72   : > { %3709 = vmatprep.subr.bf16.mxu1 %v4308_v22 }
 0xc78   : > { %3700 = vmatmul.mubr.msk.bf16.vlgmr.msra.gmra.mrb[64].mxu1 %vm682_vm1, %v2209_v20 }
 0xc79   : > { %3711 = vmatprep.mubr.msk.bf16.mxu1 %vm4309_vm0, %v4308_v22 }
 0xd0e   : > { %v2088_v24 = vpop.f32.mrb[28].mxu0 }
 0xd0f   : > { %v3683_v25 = vpop.f32.mrb[29].mxu0 }
 0xd10   : > { %v2091_v26 = vpop.f32.mrb[30].mxu0 }
 0xd11   : > { %v2142_v28 = vpack.c.bf16 %v2091_v26, %v2088_v24  ;;  %v3684_v29 = vpop.f32.mrb[31].mxu0 }
 0xd13   : > { %3693 = vmatprep.mubr.msk.bf16.mxu0 %vm682_vm1, %v2142_v28 }
 0xd43   : > { %v2135_v31 = vpop.f32.mrb[60].mxu1 }
 0xd44   : > { %v3689_v33 = vpop.f32.mrb[61].mxu1 }
 0xd45   : > { %v2138_v36 = vpop.f32.mrb[62].mxu1 }
 0xd46   : > { %v2143_v37 = vpack.c.bf16 %v2138_v36, %v2135_v31  ;;  %v3690_v38 = vpop.f32.mrb[63].mxu1 }
 0xd48   : > { %3694 = vmatmul.mubr.msk.bf16.vlgmr.msra.gmra.mrb[12].mxu0 %vm682_vm1, %v2143_v37 }
 0xd49   : > { %3704 = vmatpush3.bf16.xpose.msra.mxu0 %v2267_v39  ;;  %3705 = vmatprep.mubr.msk.bf16.mxu0 %vm4309_vm0, %v4308_v22 }
 0xd4a   : > { %3715 = vmatprep.subr.bf16.mxu0 %v4308_v22 }
 0xd4b   : > { %v2252_v40 = vpop.f32.mrb[64].mxu1 }
 0xd4c   : > { %v3701_v41 = vpop.f32.mrb[65].mxu1  ;;  %v2310_v42 = vsel %vm777_vm2, %v2252_v40, -inf }
 0xd4d   : > { %2311 = vmax.xlane.f32.xlu1 %v2310_v42  ;;  %v2255_v43 = vpop.f32.mrb[66].mxu1 }
 0xd4e   : > { %v3702_v45 = vpop.f32.mrb[67].mxu1  ;;  %v2313_v48 = vsel %vm777_vm2, %v2255_v43, -inf }
 0xd4f   : > { %2314 = vmax.xlane.f32.xlu0 %v2313_v48 }
 0xd50   : > { %3706 = vmatmul.mubr.msk.bf16.vlgmr.msra.gmra.mrb[32].mxu0 %vm682_vm1, %v2260_v50 }
 0xd51   : > { %3717 = vmatprep.mubr.msk.bf16.mxu0 %vm4309_vm0, %v4308_v22 }
 0xd5e   : > { %2518 = vrot.lane.b32.xlu1 %v4603_v30, %s4315_s9 }
 0xd65   : > { %2356 = vrot.lane.b32.xlu0 %v4636_v18, %s4314_s18 }
 0xd69   : > { %2567 = vrot.lane.b32.xlu0 %v4605_v32, %s4315_s9 }
 0xdda   : > { %v2312_v53 = vpop.xlane.xlu1 %2311 }
 0xddb   : > { %v2322_v54 = vsub.f32 %v2252_v40, %v2312_v53 }
 0xddc   : > { %v2315_v44 = vpop.xlane.xlu0 %2314 }
 0xddd   : > { %v2326_v46 = vmul.f32 1.442695, %v2322_v54  ;;  %v2323_v47 = vsub.f32 %v2255_v43, %v2315_v44 }
 0xdde   : > { %v2519_v0 = vpop.permute.xlu1 %2518 }
 0xddf   : > { %4031 = vpow2.f32 %v2326_v46  ;;  %v2328_v55 = vmul.f32 1.442695, %v2323_v47  ;;  %v2524_v9 = vsel %vm682_vm1, %v2519_v0, 0 }
 0xde0   : > { %v2357_v49 = vpop.permute.xlu0 %2356 }
 0xde1   : > { %4033 = vpow2.f32 %v2328_v55  ;;  %3710 = vmatpush3.bf16.msra.mxu1 %v2357_v49 }
 0xde2   : > { %3727 = vmatprep.subr.bf16.mxu1 %v4308_v22 }
 0xde4   : > { %v2568_v12 = vpop.permute.xlu0 %2567 }
 0xde9   : > { %v4032_v51 = vpop.eup %4031 }
 0xdea   : > { %v2334_v52 = vsel %vm777_vm2, %v4032_v51, 0.0 }
 0xdeb   : > { %v4034_v57 = vpop.eup %4033  ;;  %2335 = vadd.xlane.f32.xlu1 %v2334_v52  ;;  %v2453_v52 = vld [vmem:[#allocation10 + $0xa] sm:$0x3] }
 0xdec   : > { %v2337_v58 = vsel %vm777_vm2, %v4034_v57, 0.0 }
 0xdef   : > { %2338 = vadd.xlane.f32.xlu1 %v2337_v58 }
 0xe00   : > { %2516 = vrot.lane.b32.xlu1 %v4609_v35, %s4315_s9 }
 0xe04   : > { %2569 = vrot.lane.b32.xlu1 %v4601_v27, %s4315_s9 }
 0xe23   : > { %v2303_v59 = vpop.f32.mrb[32].mxu0 }
 0xe24   : > { %v3707_v56 = vpop.f32.mrb[33].mxu0  ;;  %v2316_v63 = vsel %vm777_vm2, %v2303_v59, -inf }
 0xe25   : > { %v2306_v60 = vpop.f32.mrb[34].mxu0 }
 0xe26   : > { %v3708_v61 = vpop.f32.mrb[35].mxu0  ;;  %v2319_v62 = vsel %vm777_vm2, %v2306_v60, -inf }
 0xe27   : > { %2320 = vmax.xlane.f32.xlu0 %v2319_v62 }
 0xe28   : > { %2317 = vmax.xlane.f32.xlu1 %v2316_v63 }
 0xe39   : > { %2403 = vrot.lane.b32.xlu1 %v4634_v17, %s4314_s18  ;;  %s4227_s18 = scalar_lea.vmem %s4226_s30, 1024 }
 0xe3a   : > { %p4229_p1 = scmp.lt.s32.totalorder %s4227_s18, %s4221_s29 }
 0xe3c   : > { %p4230_p2 = por %p4229_p1, %p4228_p11 }
 0xe3e   : > { %p4231_p12 = pnand %p4230_p2, %p4224_p7 }
 0xe78   : > { %v2336_v1 = vpop.xlane.xlu1 %2335 }
 0xe79   : > { %4035 = vrcp.f32 %v2336_v1 }
 0xe7c   : > { %v2339_v2 = vpop.xlane.xlu1 %2338 }
 0xe7d   : > { %4037 = vrcp.f32 %v2339_v2 }
 0xe80   : > { %v2517_v8 = vpop.permute.xlu1 %2516 }
 0xe83   : > { %v4036_v3 = vpop.eup %4035 }
 0xe84   : > { %v2350_v5 = vmul.f32 %v4036_v3, %v4032_v51  ;;  %v2570_v10 = vpop.permute.xlu1 %2569 }
 0xe85   : > { %v2575_v11 = vsel %vm682_vm1, %v2570_v10, 0 }
 0xe87   : > { %v4038_v4 = vpop.eup %4037 }
 0xe88   : > { %v2351_v6 = vmul.f32 %v4038_v4, %v4034_v57  ;;  %v2461_v57 = vsel %vm1173_vm3, %v2453_v52, 0 }
 0xe8a   : > { %v2354_v7 = vpack.c.bf16 %v2351_v6, %v2350_v5 }
 0xe8c   : > { %3712 = vmatmul.mubr.msk.bf16.vlgmr.msra.gmra.mrb[68].mxu1 %vm777_vm2, %v2354_v7 }
 0xe8d   : > { %3728 = vmatpush3.bf16.xpose.msra.mxu1 %v2524_v9  ;;  %3729 = vmatprep.mubr.msk.bf16.mxu1 %vm4309_vm0, %v4308_v22 }
 0xe8e   : > { %3733 = vmatprep.subr.bf16.mxu1 %v4308_v22 }
 0xe94   : > { %3730 = vmatmul.mubr.msk.bf16.vlgmr.msra.gmra.mrb[72].mxu1 %vm682_vm1, %v2517_v8 }
 0xe95   : > { %3734 = vmatpush3.bf16.xpose.msra.mxu1 %v2575_v11  ;;  %3735 = vmatprep.mubr.msk.bf16.mxu1 %vm4309_vm0, %v4308_v22 }
 0xe96   : > { %3745 = vmatprep.subr.bf16.mxu1 %v4308_v22 }
 0xe9c   : > { %3736 = vmatmul.mubr.msk.bf16.vlgmr.msra.gmra.mrb[76].mxu1 %vm682_vm1, %v2568_v12 }
 0xe9d   : > { %3747 = vmatprep.mubr.msk.bf16.mxu1 %vm4309_vm0, %v4308_v22 }
 0xeb4   : > { %v2321_v13 = vpop.xlane.xlu0 %2320 }
 0xeb5   : > { %v2325_v14 = vsub.f32 %v2306_v60, %v2321_v13  ;;  %v2318_v15 = vpop.xlane.xlu1 %2317 }
 0xeb6   : > { %v2324_v16 = vsub.f32 %v2303_v59, %v2318_v15 }
 0xeb7   : > { %v2332_v19 = vmul.f32 1.442695, %v2325_v14 }
 0xeb8   : > { %v2330_v20 = vmul.f32 1.442695, %v2324_v16 }
 0xeb9   : > { %v2404_v21 = vpop.permute.xlu1 %2403 }
 0xeba   : > { %4039 = vpow2.f32 %v2330_v20  ;;  %3716 = vmatpush3.bf16.msra.mxu0 %v2404_v21 }
 0xebb   : > { %4041 = vpow2.f32 %v2332_v19  ;;  %3820 = vmatprep.subr.msk.bf16.mxu0 %vm1173_vm3, %v2453_v52 }
 0xec4   : > { %v4040_v23 = vpop.eup %4039 }
 0xec5   : > { %v2340_v24 = vsel %vm777_vm2, %v4040_v23, 0.0  ;;  %v4042_v25 = vpop.eup %4041 }
 0xec6   : > { %2341 = vadd.xlane.f32.xlu0 %v2340_v24  ;;  %v2343_v26 = vsel %vm777_vm2, %v4042_v25, 0.0 }
 0xeca   : > { %2344 = vadd.xlane.f32.xlu0 %v2343_v26 }
 0xf53   : > { %v2342_v28 = vpop.xlane.xlu0 %2341 }
 0xf54   : > { %4043 = vrcp.f32 %v2342_v28 }
 0xf57   : > { %v2345_v29 = vpop.xlane.xlu0 %2344 }
 0xf58   : > { %4045 = vrcp.f32 %v2345_v29 }
 0xf5e   : > { %v4044_v33 = vpop.eup %4043 }
 0xf5f   : > { %v2396_v31 = vpop.f32.mrb[68].mxu1  ;;  %v2352_v40 = vmul.f32 %v4044_v33, %v4040_v23 }
 0xf60   : > { %v3713_v34 = vpop.f32.mrb[69].mxu1 }
 0xf61   : > { %v2399_v36 = vpop.f32.mrb[70].mxu1 }
 0xf62   : > { %v4046_v37 = vpop.eup %4045  ;;  %v2450_v38 = vpack.c.bf16 %v2399_v36, %v2396_v31  ;;  %v3714_v39 = vpop.f32.mrb[71].mxu1 }
 0xf63   : > { %v2353_v41 = vmul.f32 %v4046_v37, %v4042_v25 }
 0xf65   : > { %v2355_v42 = vpack.c.bf16 %v2353_v41, %v2352_v40  ;;  %v2761_v41 = vld [vmem:[#allocation10 + $0xc] sm:$0x3] }
 0xf67   : > { %3718 = vmatmul.mubr.msk.bf16.vlgmr.msra.gmra.mrb[36].mxu0 %vm777_vm2, %v2355_v42  ;;  %v2560_v43 = vpop.f32.mrb[72].mxu1  ;;  %v2769_v42 = vsel %vm1173_vm3, %v2761_v41, 0 }
 0xf68   : > { %3723 = vmatprep.mubr.msk.bf16.mxu0 %vm682_vm1, %v2450_v38  ;;  %v3731_v45 = vpop.f32.mrb[73].mxu1  ;;  %v2618_v48 = vsel %vm777_vm2, %v2560_v43, -inf  ;;  %3722 = vmatpush3.bf16.msra.mxu0 %v2461_v57 }
 0xf69   : > { %2619 = vmax.xlane.f32.xlu0 %v2618_v48  ;;  %v2563_v50 = vpop.f32.mrb[74].mxu1  ;;  %3739 = vmatprep.subr.bf16.mxu0 %v4308_v22 }
 0xf6a   : > { %v3732_v53 = vpop.f32.mrb[75].mxu1  ;;  %v2621_v54 = vsel %vm777_vm2, %v2563_v50, -inf }
 0xf6d   : > { %2622 = vmax.xlane.f32.xlu0 %v2621_v54 }
 0xf6f   : > { %v2611_v44 = vpop.f32.mrb[76].mxu1 }
 0xf70   : > { %v3737_v46 = vpop.f32.mrb[77].mxu1  ;;  %v2624_v47 = vsel %vm777_vm2, %v2611_v44, -inf }
 0xf71   : > { %2625 = vmax.xlane.f32.xlu0 %v2624_v47  ;;  %v2614_v55 = vpop.f32.mrb[78].mxu1 }
 0xf72   : > { %v3738_v49 = vpop.f32.mrb[79].mxu1  ;;  %v2627_v51 = vsel %vm777_vm2, %v2614_v55, -inf }
 0xf75   : > { %2628 = vmax.xlane.f32.xlu0 %v2627_v51 }
 0xff6   : > { %v2620_v58 = vpop.xlane.xlu0 %2619 }
 0xff7   : > { %v2630_v59 = vsub.f32 %v2560_v43, %v2620_v58 }
 0xff9   : > { %v2634_v56 = vmul.f32 1.442695, %v2630_v59 }
 0xffa   : > { %v2623_v60 = vpop.xlane.xlu0 %2622 }
 0xffb   : > { %4047 = vpow2.f32 %v2634_v56  ;;  %v2631_v61 = vsub.f32 %v2563_v50, %v2623_v60 }
 0xffd   : > { %v2636_v62 = vmul.f32 1.442695, %v2631_v61 }
 0xffe   : > { %v2626_v63 = vpop.xlane.xlu0 %2625 }
 0xfff   : > { %4049 = vpow2.f32 %v2636_v62  ;;  %v2632_v0 = vsub.f32 %v2611_v44, %v2626_v63 }
0x1001   : > { %v2638_v1 = vmul.f32 1.442695, %v2632_v0 }
0x1002   : > { %v2629_v2 = vpop.xlane.xlu0 %2628 }
0x1003   : > { %4051 = vpow2.f32 %v2638_v1  ;;  %v2633_v3 = vsub.f32 %v2614_v55, %v2629_v2 }
0x1005   : > { %v4048_v4 = vpop.eup %4047  ;;  %v2640_v5 = vmul.f32 1.442695, %v2633_v3 }
0x1006   : > { %v2642_v6 = vsel %vm777_vm2, %v4048_v4, 0.0 }
0x1007   : > { %4053 = vpow2.f32 %v2640_v5  ;;  %2643 = vadd.xlane.f32.xlu1 %v2642_v6 }
0x1009   : > { %v4050_v7 = vpop.eup %4049 }
0x100a   : > { %v2645_v8 = vsel %vm777_vm2, %v4050_v7, 0.0 }
0x100b   : > { %2646 = vadd.xlane.f32.xlu0 %v2645_v8 }
0x100d   : > { %v4052_v9 = vpop.eup %4051 }
0x100e   : > { %v2648_v10 = vsel %vm777_vm2, %v4052_v9, 0.0 }
0x100f   : > { %2649 = vadd.xlane.f32.xlu0 %v2648_v10 }
0x1011   : > { %v4054_v11 = vpop.eup %4053 }
0x1012   : > { %v2651_v12 = vsel %vm777_vm2, %v4054_v11, 0.0 }
0x1013   : > { %2652 = vadd.xlane.f32.xlu0 %v2651_v12 }
0x1018   : > { %2711 = vrot.lane.b32.xlu1 %v4634_v17, %s4315_s9 }
0x1029   : > { %2664 = vrot.lane.b32.xlu0 %v4636_v18, %s4315_s9 }
0x102d   : > { %2826 = vrot.lane.b32.xlu0 %v4603_v30, %s4316_s26 }
0x1031   : > { %2877 = vrot.lane.b32.xlu0 %v4601_v27, %s4316_s26 }
0x1035   : > { %2824 = vrot.lane.b32.xlu0 %v4609_v35, %s4316_s26 }
0x1039   : > { %2875 = vrot.lane.b32.xlu0 %v4605_v32, %s4316_s26 }
0x103a   : > { %v2443_v13 = vpop.f32.mrb[36].mxu0 }
0x103b   : > { %v3719_v14 = vpop.f32.mrb[37].mxu0 }
0x103c   : > { %v2446_v15 = vpop.f32.mrb[38].mxu0 }
0x103d   : > { %v2451_v16 = vpack.c.bf16 %v2446_v15, %v2443_v13  ;;  %v3720_v19 = vpop.f32.mrb[39].mxu0 }
0x103f   : > { %3724 = vmatmul.mubr.msk.bf16.vlgmr.msra.gmra.mrb[12].mxu0 %vm682_vm1, %v2451_v16 }
0x1040   : > { %3741 = vmatprep.mubr.msk.bf16.mxu0 %vm4309_vm0, %v4308_v22 }
0x1094   : > { %v2644_v30 = vpop.xlane.xlu1 %2643 }
0x1095   : > { %4055 = vrcp.f32 %v2644_v30 }
0x1098   : > { %v2712_v20 = vpop.permute.xlu1 %2711  ;;  %v2647_v27 = vpop.xlane.xlu0 %2646 }
0x1099   : > { %4057 = vrcp.f32 %v2647_v27  ;;  %3746 = vmatpush3.bf16.msra.mxu1 %v2712_v20 }
0x109a   : > { %3757 = vmatprep.subr.bf16.mxu1 %v4308_v22 }
0x109c   : > { %v2650_v35 = vpop.xlane.xlu0 %2649 }
0x109d   : > { %4059 = vrcp.f32 %v2650_v35 }
0x109f   : > { %v4056_v21 = vpop.eup %4055 }
0x10a0   : > { %v2653_v32 = vpop.xlane.xlu0 %2652  ;;  %v2658_v24 = vmul.f32 %v4056_v21, %v4048_v4 }
0x10a1   : > { %4061 = vrcp.f32 %v2653_v32 }
0x10a3   : > { %v4058_v23 = vpop.eup %4057 }
0x10a4   : > { %v2659_v25 = vmul.f32 %v4058_v23, %v4050_v7  ;;  %v2665_v26 = vpop.permute.xlu0 %2664 }
0x10a5   : > { %3740 = vmatpush3.bf16.msra.mxu0 %v2665_v26 }
0x10a6   : > { %v2662_v28 = vpack.c.bf16 %v2659_v25, %v2658_v24  ;;  %3821 = vmatprep.subr.msk.bf16.mxu0 %vm1173_vm3, %v2761_v41 }
0x10a7   : > { %v4060_v29 = vpop.eup %4059 }
0x10a8   : > { %3742 = vmatmul.mubr.msk.bf16.vlgmr.msra.gmra.mrb[40].mxu0 %vm777_vm2, %v2662_v28  ;;  %v2827_v33 = vpop.permute.xlu0 %2826  ;;  %v2660_v34 = vmul.f32 %v4060_v29, %v4052_v9 }
0x10a9   : > { %v2832_v38 = vsel %vm682_vm1, %v2827_v33, 0  ;;  %3752 = vmatpush3.bf16.msra.mxu0 %v2769_v42 }
0x10aa   : > { %3763 = vmatprep.subr.bf16.mxu0 %v4308_v22 }
0x10ab   : > { %v4062_v31 = vpop.eup %4061 }
0x10ac   : > { %v2661_v36 = vmul.f32 %v4062_v31, %v4054_v11  ;;  %v2878_v39 = vpop.permute.xlu0 %2877 }
0x10ad   : > { %v2883_v49 = vsel %vm682_vm1, %v2878_v39, 0  ;;  %v3069_v39 = vld [vmem:[#allocation10 + $0xe] sm:$0x3] }
0x10ae   : > { %v2663_v37 = vpack.c.bf16 %v2661_v36, %v2660_v34 }
0x10b0   : > { %3748 = vmatmul.mubr.msk.bf16.vlgmr.msra.gmra.mrb[80].mxu1 %vm777_vm2, %v2663_v37  ;;  %v2825_v40 = vpop.permute.xlu0 %2824 }
0x10b1   : > { %3758 = vmatpush3.bf16.xpose.msra.mxu1 %v2832_v38  ;;  %3759 = vmatprep.mubr.msk.bf16.mxu1 %vm4309_vm0, %v4308_v22 }
0x10b2   : > { %3769 = vmatprep.subr.bf16.mxu1 %v4308_v22 }
0x10b4   : > { %v2876_v60 = vpop.permute.xlu0 %2875 }
0x10b8   : > { %3760 = vmatmul.mubr.msk.bf16.vlgmr.msra.gmra.mrb[84].mxu1 %vm682_vm1, %v2825_v40  ;;  %v3077_v40 = vsel %vm1173_vm3, %v3069_v39, 0 }
0x10b9   : > { %3771 = vmatprep.mubr.msk.bf16.mxu1 %vm4309_vm0, %v4308_v22 }
0x117b   : > { %v2704_v43 = vpop.f32.mrb[40].mxu0 }
0x117c   : > { %v3743_v45 = vpop.f32.mrb[41].mxu0 }
0x117d   : > { %v2707_v48 = vpop.f32.mrb[42].mxu0 }
0x117e   : > { %v2758_v50 = vpack.c.bf16 %v2707_v48, %v2704_v43  ;;  %v3744_v53 = vpop.f32.mrb[43].mxu0 }
0x1180   : > { %3753 = vmatprep.mubr.msk.bf16.mxu0 %vm682_vm1, %v2758_v50 }
0x1183   : > { %v2751_v54 = vpop.f32.mrb[80].mxu1 }
0x1184   : > { %v3749_v44 = vpop.f32.mrb[81].mxu1 }
0x1185   : > { %v2754_v46 = vpop.f32.mrb[82].mxu1 }
0x1186   : > { %v2759_v47 = vpack.c.bf16 %v2754_v46, %v2751_v54  ;;  %v3750_v55 = vpop.f32.mrb[83].mxu1 }
0x1188   : > { %3754 = vmatmul.mubr.msk.bf16.vlgmr.msra.gmra.mrb[12].mxu0 %vm682_vm1, %v2759_v47  ;;  %v3361_v47 = vld [vmem:[%s5030_s5] ss:$0 sm:$0xff] }
0x1189   : > { %3764 = vmatpush3.bf16.xpose.msra.mxu0 %v2883_v49  ;;  %3765 = vmatprep.mubr.msk.bf16.mxu0 %vm4309_vm0, %v4308_v22 }
0x118a   : > { %3775 = vmatprep.subr.bf16.mxu0 %v4308_v22 }
0x118b   : > { %v2868_v51 = vpop.f32.mrb[84].mxu1 }
0x118c   : > { %v3761_v52 = vpop.f32.mrb[85].mxu1  ;;  %v2926_v57 = vsel %vm777_vm2, %v2868_v51, -inf }
0x118d   : > { %2927 = vmax.xlane.f32.xlu0 %v2926_v57  ;;  %v2871_v58 = vpop.f32.mrb[86].mxu1 }
0x118e   : > { %v3762_v59 = vpop.f32.mrb[87].mxu1  ;;  %v2929_v56 = vsel %vm777_vm2, %v2871_v58, -inf }
0x118f   : > { %2930 = vmax.xlane.f32.xlu1 %v2929_v56 }
0x1190   : > { %3766 = vmatmul.mubr.msk.bf16.vlgmr.msra.gmra.mrb[44].mxu0 %vm682_vm1, %v2876_v60 }
0x1191   : > { %3777 = vmatprep.mubr.msk.bf16.mxu0 %vm4309_vm0, %v4308_v22 }
0x121a   : > { %v2928_v61 = vpop.xlane.xlu0 %2927 }
0x121b   : > { %v2938_v62 = vsub.f32 %v2868_v51, %v2928_v61 }
0x121c   : > { %v2931_v2 = vpop.xlane.xlu1 %2930 }
0x121d   : > { %v2942_v63 = vmul.f32 1.442695, %v2938_v62  ;;  %v2939_v3 = vsub.f32 %v2871_v58, %v2931_v2 }
0x121f   : > { %4063 = vpow2.f32 %v2942_v63  ;;  %v2944_v4 = vmul.f32 1.442695, %v2939_v3 }
0x1221   : > { %4065 = vpow2.f32 %v2944_v4 }
0x1229   : > { %v4064_v0 = vpop.eup %4063 }
0x122a   : > { %v2950_v1 = vsel %vm777_vm2, %v4064_v0, 0.0 }
0x122b   : > { %2951 = vadd.xlane.f32.xlu1 %v2950_v1  ;;  %v4066_v10 = vpop.eup %4065 }
0x122c   : > { %v2953_v11 = vsel %vm777_vm2, %v4066_v10, 0.0 }
0x1263   : > { %v2919_v5 = vpop.f32.mrb[44].mxu0 }
0x1264   : > { %v3767_v6 = vpop.f32.mrb[45].mxu0  ;;  %v2932_v7 = vsel %vm777_vm2, %v2919_v5, -inf }
0x1265   : > { %v2922_v8 = vpop.f32.mrb[46].mxu0  ;;  %2933 = vmax.xlane.f32.xlu0 %v2932_v7 }
0x1266   : > { %v3768_v9 = vpop.f32.mrb[47].mxu0  ;;  %v2935_v22 = vsel %vm777_vm2, %v2922_v8, -inf }
0x1269   : > { %2936 = vmax.xlane.f32.xlu0 %v2935_v22 }
0x126d   : > { %2954 = vadd.xlane.f32.xlu0 %v2953_v11 }
0x12b8   : > { %v2952_v21 = vpop.xlane.xlu1 %2951 }
0x12f2   : > { %v2934_v12 = vpop.xlane.xlu0 %2933 }
0x12f3   : > { %v2940_v13 = vsub.f32 %v2919_v5, %v2934_v12 }
0x12f5   : > { %v2946_v14 = vmul.f32 1.442695, %v2940_v13 }
0x12f6   : > { %v2937_v15 = vpop.xlane.xlu0 %2936 }
0x12f7   : > { %4067 = vpow2.f32 %v2946_v14  ;;  %v2941_v16 = vsub.f32 %v2922_v8, %v2937_v15 }
0x12f9   : > { %v2948_v19 = vmul.f32 1.442695, %v2941_v16 }
0x12fa   : > { %v2955_v32 = vpop.xlane.xlu0 %2954 }
0x12fb   : > { %4069 = vpow2.f32 %v2948_v19 }
0x12fc   : > { %4071 = vrcp.f32 %v2955_v32 }
0x12fd   : > { %4073 = vrcp.f32 %v2952_v21 }
0x1301   : > { %v4068_v30 = vpop.eup %4067 }
0x1302   : > { %v2956_v20 = vsel %vm777_vm2, %v4068_v30, 0.0 }
0x1303   : > { %2957 = vadd.xlane.f32.xlu1 %v2956_v20 }
0x1305   : > { %v4070_v27 = vpop.eup %4069 }
0x1306   : > { %v2959_v35 = vsel %vm777_vm2, %v4070_v27, 0.0  ;;  %v4072_v23 = vpop.eup %4071 }
0x1307   : > { %2960 = vadd.xlane.f32.xlu0 %v2959_v35  ;;  %v4074_v25 = vpop.eup %4073  ;;  %v2967_v26 = vmul.f32 %v4072_v23, %v4066_v10 }
0x1308   : > { %v2966_v28 = vmul.f32 %v4074_v25, %v4064_v0 }
0x130a   : > { %v2970_v33 = vpack.c.bf16 %v2967_v26, %v2966_v28 }
0x1314   : > { %2972 = vrot.lane.b32.xlu1 %v4636_v18, %s4316_s26 }
0x131d   : > { %3019 = vrot.lane.b32.xlu0 %v4634_v17, %s4316_s26 }
0x1390   : > { %v2958_v24 = vpop.xlane.xlu1 %2957 }
0x1391   : > { %4075 = vrcp.f32 %v2958_v24 }
0x1394   : > { %v2961_v29 = vpop.xlane.xlu0 %2960  ;;  %v2973_v31 = vpop.permute.xlu1 %2972 }
0x1395   : > { %4077 = vrcp.f32 %v2961_v29  ;;  %3770 = vmatpush3.bf16.msra.mxu1 %v2973_v31 }
0x1398   : > { %v3020_v34 = vpop.permute.xlu0 %3019  ;;  %3772 = vmatmul.mubr.msk.bf16.vlgmr.msra.gmra.mrb[88].mxu1 %vm777_vm2, %v2970_v33 }
0x1399   : > { %3776 = vmatpush3.bf16.msra.mxu0 %v3020_v34 }
0x139a   : > { %3822 = vmatprep.subr.msk.bf16.mxu0 %vm1173_vm3, %v3069_v39 }
0x139b   : > { %v4076_v17 = vpop.eup %4075 }
0x139c   : > { %v2968_v36 = vmul.f32 %v4076_v17, %v4068_v30 }
0x139f   : > { %v4078_v18 = vpop.eup %4077 }
0x13a0   : > { %v2969_v37 = vmul.f32 %v4078_v18, %v4070_v27 }
0x13a2   : > { %v2971_v38 = vpack.c.bf16 %v2969_v37, %v2968_v36 }
0x13a4   : > { %3778 = vmatmul.mubr.msk.bf16.vlgmr.msra.gmra.mrb[48].mxu0 %vm777_vm2, %v2971_v38 }
0x13a5   : > { %3782 = vmatpush3.bf16.msra.mxu0 %v3077_v40 }
0x146b   : > { %v3012_v41 = vpop.f32.mrb[88].mxu1 }
0x146c   : > { %v3773_v42 = vpop.f32.mrb[89].mxu1 }
0x146d   : > { %v3015_v43 = vpop.f32.mrb[90].mxu1 }
0x146e   : > { %v3066_v45 = vpack.c.bf16 %v3015_v43, %v3012_v41  ;;  %v3774_v48 = vpop.f32.mrb[91].mxu1 }
0x1470   : > { %3783 = vmatprep.mubr.msk.bf16.mxu0 %vm682_vm1, %v3066_v45 }
0x1477   : > { %v3059_v50 = vpop.f32.mrb[48].mxu0 }
0x1478   : > { %v3779_v53 = vpop.f32.mrb[49].mxu0 }
0x1479   : > { %v3062_v54 = vpop.f32.mrb[50].mxu0 }
0x147a   : > { %v3067_v44 = vpack.c.bf16 %v3062_v54, %v3059_v50  ;;  %v3780_v46 = vpop.f32.mrb[51].mxu0 }
0x147c   : > { %3784 = vmatmul.mubr.msk.bf16.vlgmr.msra.gmra.mrb[12].mxu0 %vm682_vm1, %v3067_v44 }
0x154f   : > { %v3785_v55 = vpop.f32.mrb[12].mxu0 }
0x1550   : > { %v3141_v49 = vadd.f32 %v3785_v55, %v3361_v47  ;;  %v3113_v51 = vpop.f32.mrb[13].mxu0 }
0x1551   : > { %v3139_v52 = vadd.f32 %v3361_v47, %v3113_v51  ;;  %v3786_v57 = vpop.f32.mrb[14].mxu0 }
0x1552   : > { %3145 = vst [vmem:[%s327_s10 + $0x10] sm:$0xff] %v3141_v49  ;;  %v3142_v58 = vadd.f32 %v3786_v57, %v3361_v47  ;;  %v3116_v59 = vpop.f32.mrb[15].mxu0 }
0x1553   : > { %3143 = vst [vmem:[%s327_s10] sm:$0xff] %v3139_v52  ;;  %v3140_v56 = vadd.f32 %v3361_v47, %v3116_v59 }
0x1554   : > { %3146 = vst [vmem:[%s327_s10 + $0x18] sm:$0xff] %v3142_v58 }
0x1555   : > { %3144 = vst [vmem:[%s327_s10 + $0x8] sm:$0xff] %v3140_v56 }
0x1556   : > { %4234 = shalt.err (!%p4231_p12)
}
0x1557   : > { %s4235_s9 = scalar_lea.hbm %s4982_s14, 512  ;;  %s4239_s13 = scalar_lea.hbm %s5031_s6, 2048 }
0x1558   : > { %p4236_p9 = scmp.ne.s32.totalorder %s4982_s14, %s4235_s9  ;;  %p4240_p4 = scmp.lt.u32.totalorder %s4982_s14, %s5031_s6 }
0x1559   : > { %p4241_p8 = scmp.lt.u32.totalorder %s4239_s13, %s4235_s9  ;;  %p4243_p0 = scmp.lt.u32.totalorder %s4235_s9, %s4982_s14 }
0x155a   : > { %p4237_p13 = pnand %p4236_p9, %p4525_p3 }
0x155b   : > { %p4242_p6 = por %p4241_p8, %p4240_p4 }
0x155c   : > { %p4238_p10 = pneg %p4237_p13 }
0x155d   : > { %p4244_p5 = por %p4243_p0, %p4242_p6 }
0x155f   : > { %p4245_p7 = pnand %p4244_p5, %p4238_p10 }
0x1561   : > { %4248 = shalt.err (!%p4245_p7)
}
0x1562   : > { %s4318_s8 = smov 128   ;;  %s4319_s27 = smov 8  }
0x1563   : > { %3841 = dma.vmem_to_hbm [thread:$0]  (%p4525_p3), %s4977_s15, 512, %s4982_s14, %s3148_s25, %s4318_s8, %s4318_s8, %s4319_s27  }
0x1564 PF: > { %p3873_p11 = scmp.ge.s32.totalorder %s4295_s24, 2  ;;  %s3176_s29 = sand.u32 1, %s4283_s21  }
0x1565   : > { %p5049_p1 = scmp.ne.s32.totalorder %s5036_s28, 0  ;;  %s3177_s7 = scalar_lea.sflag [#allocation4], %s3176_s29 }
0x1567   : > { %p3861_p2 = pnand %p3873_p11, %p5049_p1 }
0x1569   : > { %4278 = dma.done.wait (!%p3861_p2), %s3177_s7, 512  }
0x156a   : > { %4280 = vsyncadd (!%p3861_p2), %s3177_s7, 4294966784  ;;  %p21_p12 = scmp.ge.s32.totalorder %s4512_s11, 6   ;;  %s5050_s21 = smov %s4287_s22 }
0x156b   : > { %s5051_s22 = smov %s4291_s23  ;;  %s5052_s23 = smov %s4521_s16 }
0x156c   : > { %s5053_s24 = smov %s4512_s11  ;;  %23 = sbr.rel (!%p21_p12) target bundleno = 7 (0x7), region = 112 }
0x1573   :  { %3182 = vsyncpa [#allocation3], 1 }
0x1574   :  { %3184 = vsyncpa [#allocation3 + $0x1], 1 }
0x1575   :  { %3185 = vsyncpa [#allocation6], 1 }
0x1576   :  { %3186 = vsyncpa [#allocation9], 1 }
0x1577   :  { %3187 = vsyncpa [#allocation4], 1 }
0x1578   :  { %3189 = vsyncpa [#allocation4 + $0x1], 1 }

</bundles_post_ra>
